<compile_context>
chip_gen: v7x
topology: tpu7x:2x2x1
jax: 0.10.0
libtpu: 0.0.40
codegen_flags: <defaults>
</compile_context>

<pallas_src>
import functools

import jax
import jax.numpy as jnp
from jax import lax
from jax.experimental import pallas as pl
from jax.experimental.pallas import tpu as pltpu


def _round_up(x, m):
    return ((x + m - 1) // m) * m


def _supcon_kernel(fr_ref, fc_ref, lr_ref, lc_ref, out_ref,
                   m_sc, l_sc, s_sc, c_sc, *,
                   n_valid, blk_q, blk_k, loss_scale):
    """One (row tile, column tile) step of the online SupCon accumulation."""
    i = pl.program_id(0)          # anchor row tile   ("parallel")
    j = pl.program_id(1)          # contrast col tile ("arbitrary" / reduction)

    @pl.when(j == 0)
    def _init():
        m_sc[...] = jnp.full_like(m_sc, -jnp.inf)
        l_sc[...] = jnp.zeros_like(l_sc)
        s_sc[...] = jnp.zeros_like(s_sc)
        c_sc[...] = jnp.zeros_like(c_sc)

    # Raw logits tile, already divided by temperature (1/T folded into the
    # anchor operand in the wrapper).  NT matmul: contract dim 1 of both
    # operands -> no transposed feature copy; bf16 in, f32 accumulation.
    raw = lax.dot_general(
        fr_ref[...], fc_ref[...],
        dimension_numbers=(((1,), (1,)), ((), ())),
        preferred_element_type=jnp.float32)                    # [blk_q, blk_k]

    # Rebuild masks for this tile from labels + iota (no N x N mask DMA).
    row_ids = i * blk_q + lax.broadcasted_iota(jnp.int32, (blk_q, 1), 0)
    col_ids = j * blk_k + lax.broadcasted_iota(jnp.int32, (1, blk_k), 1)
    not_self = row_ids != col_ids
    col_ok = col_ids < n_valid                        # drop zero-padded cols
    lmask = jnp.logical_and(not_self, col_ok)         # denominator mask
    pmask = jnp.logical_and(lr_ref[...] == lc_ref[...], lmask)   # positives

    # Online softmax.  The running max may include self / padded logits (it
    # cancels exactly in the finalize expression below).
    m_prev = m_sc[...]
    m_new = jnp.maximum(m_prev, jnp.max(raw, axis=1, keepdims=True))
    alpha = jnp.exp(m_prev - m_new)
    p = jnp.where(lmask, jnp.exp(raw - m_new), 0.0)
    l_sc[...] = alpha * l_sc[...] + jnp.sum(p, axis=1, keepdims=True)
    s_sc[...] = s_sc[...] + jnp.sum(jnp.where(pmask, raw, 0.0),
                                    axis=1, keepdims=True)
    c_sc[...] = c_sc[...] + jnp.sum(pmask.astype(jnp.float32),
                                    axis=1, keepdims=True)
    m_sc[...] = m_new

    @pl.when(j == pl.num_programs(1) - 1)
    def _finalize():
        # sum(mask*log_prob)/count == s/c - (max + log denom).  Exact
        # reciprocal (runs once per row tile) keeps parity with the reference;
        # the O(N^2) divides/reductions of the naive formulation are gone.
        inv_c = pl.reciprocal(c_sc[...])
        mean_log_prob = s_sc[...] * inv_c - (m_sc[...] + jnp.log(l_sc[...]))
        out_ref[...] = (-loss_scale) * mean_log_prob


def supcon_loss(features, labels=None, mask=None, *,
                temperature=0.07, contrast_mode='all', base_temperature=0.07,
                block_size=256, compute_dtype=jnp.bfloat16):
    """Pallas TPU implementation of SupConLoss.forward (contrast_mode='all').

    features: [bsz, n_views, ...] (trailing dims flattened to D)
    labels:   optional [bsz] integer labels (None + mask=None -> SimCLR)
    block_size: square logits tile size; 256 suits v6e/v7x MXU, 128 for v5e.
    compute_dtype: MXU input dtype (bf16 by default; f32 accumulation always).
    """
    if features.ndim < 3:
        raise ValueError('`features` needs to be [bsz, n_views, ...]')
    if features.ndim > 3:
        features = features.reshape(features.shape[0], features.shape[1], -1)
    bsz, n_views, dim = features.shape

    if contrast_mode != 'all':
        # TODO(synk): contrast_mode='one' needs a rectangular [bsz, N] logits path.
        raise NotImplementedError("Only contrast_mode='all' is implemented")
    if labels is not None and mask is not None:
        raise ValueError('Cannot define both `labels` and `mask`')
    if mask is not None:
        # TODO(synk): arbitrary [bsz, bsz] masks need a tiled-mask input path
        # (not expressible as per-tile label equality).
        raise NotImplementedError('Explicit `mask` argument not supported')

    if labels is None:
        gids = jnp.arange(bsz, dtype=jnp.int32)           # SimCLR: eye(bsz)
    else:
        labels = jnp.asarray(labels).reshape(-1)
        if labels.shape[0] != bsz:
            raise ValueError('Num of labels does not match num of features')
        gids = labels.astype(jnp.int32)

    n_total = bsz * n_views
    # view-major stacking == torch.cat(torch.unbind(features, dim=1), dim=0)
    feat = jnp.transpose(features, (1, 0, 2)).reshape(n_total, dim)
    feat = feat.astype(jnp.float32)
    lab = jnp.tile(gids, n_views)                         # [N]

    # Pad to MXU / lane friendly sizes (128-aligned); padding handled in-kernel.
    blk = min(int(block_size), _round_up(n_total, 128))
    n_pad = _round_up(n_total, blk)
    d_pad = _round_up(dim, 128)

    feat_p = jnp.zeros((n_pad, d_pad), jnp.float32).at[:n_total, :dim].set(feat)
    lab_p = jnp.full((n_pad,), -1, jnp.int32).at[:n_total].set(lab)

    inv_t = jnp.float32(1.0 / float(temperature))
    f_row = (feat_p * inv_t).astype(compute_dtype)        # anchors, pre-scaled
    f_col = feat_p.astype(compute_dtype)                  # contrasts
    lab_row = lab_p.reshape(n_pad, 1)
    lab_col = lab_p.reshape(1, n_pad)

    grid = (n_pad // blk, n_pad // blk)
    kernel = functools.partial(
        _supcon_kernel,
        n_valid=n_total, blk_q=blk, blk_k=blk,
        loss_scale=float(temperature) / float(base_temperature))

    per_row_loss = pl.pallas_call(
        kernel,
        out_shape=jax.ShapeDtypeStruct((n_pad, 1), jnp.float32),
        grid_spec=pltpu.PrefetchScalarGridSpec(
            num_scalar_prefetch=0,
            grid=grid,
            in_specs=[
                pl.BlockSpec((blk, d_pad), lambda i, j: (i, 0)),   # anchors
                pl.BlockSpec((blk, d_pad), lambda i, j: (j, 0)),   # contrasts
                pl.BlockSpec((blk, 1), lambda i, j: (i, 0)),       # row labels
                pl.BlockSpec((1, blk), lambda i, j: (0, j)),       # col labels
            ],
            out_specs=pl.BlockSpec((blk, 1), lambda i, j: (i, 0)),
            scratch_shapes=[pltpu.VMEM((blk, 1), jnp.float32)] * 4,  # m, l, s, c
        ),
        compiler_params=pltpu.CompilerParams(
            dimension_semantics=("parallel", "arbitrary"),
            # above the 16/32 MiB scoped defaults, below v7x's 64 MiB physical
            vmem_limit_bytes=48 * 1024 * 1024),
    )(f_row, f_col, lab_row, lab_col)

    # loss.view(anchor_count, batch_size).mean() == mean over the N real rows
    # (padded rows are dropped here before the mean, so their NaN/inf never
    # propagates).
    return jnp.mean(per_row_loss[:n_total, 0])


def _supcon_ref(features, labels=None, temperature=0.07, base_temperature=0.07):
    """Pure-JAX f32 reference mirroring the PyTorch code (contrast_mode='all')."""
    bsz, n_views, _ = features.shape
    if labels is None:
        base = jnp.eye(bsz, dtype=jnp.float32)
    else:
        l = labels.reshape(-1, 1)
        base = (l == l.T).astype(jnp.float32)
    f = jnp.transpose(features, (1, 0, 2)).reshape(bsz * n_views, -1)
    f = f.astype(jnp.float32)
    logits = (f @ f.T) / temperature
    logits = logits - jnp.max(logits, axis=1, keepdims=True)
    n = bsz * n_views
    m = jnp.tile(base, (n_views, n_views))
    lm = 1.0 - jnp.eye(n, dtype=jnp.float32)
    m = m * lm
    exp_l = jnp.exp(logits) * lm
    log_prob = logits - jnp.log(exp_l.sum(1, keepdims=True))
    mean_log_prob_pos = (m * log_prob).sum(1) / m.sum(1)
    return jnp.mean(-(temperature / base_temperature) * mean_log_prob_pos)


if __name__ == "__main__":
    key = jax.random.PRNGKey(0)
    k1, k2 = jax.random.split(key)

    bsz, n_views, dim = 8, 2, 64
    feats = jax.random.normal(k1, (bsz, n_views, dim), dtype=jnp.float32)
    feats = feats / jnp.linalg.norm(feats, axis=-1, keepdims=True)  # unit norm
    labels = jax.random.randint(k2, (bsz,), 0, 3)

    # Supervised path, f32 MXU inputs (algorithmic-exactness check).
    loss_f32 = jax.block_until_ready(
        supcon_loss(feats, labels=labels, compute_dtype=jnp.float32))
    ref_sup = _supcon_ref(feats, labels)
    assert jnp.allclose(loss_f32, ref_sup, rtol=2e-2, atol=2e-2), (loss_f32, ref_sup)

    # Supervised path, default bf16 MXU inputs (f32 accumulation).
    loss_bf16 = jax.block_until_ready(supcon_loss(feats, labels=labels))
    assert jnp.allclose(loss_bf16, ref_sup, rtol=3e-2, atol=3e-2), (loss_bf16, ref_sup)

    # Unsupervised (SimCLR) path: labels=None, mask=None.
    loss_simclr = jax.block_until_ready(supcon_loss(feats))
    ref_simclr = _supcon_ref(feats, None)
    assert jnp.allclose(loss_simclr, ref_simclr, rtol=3e-2, atol=3e-2), (
        loss_simclr, ref_simclr)

    print("KERNEL_OK")
</pallas_src>

<mosaic_0001>
module attributes {stable_mosaic.version = 11 : i64} {
  func.func @_supcon_kernel(%arg0: i32, %arg1: i32, %arg2: memref<128x128xf32, #tpu.memory_space<vmem>>, %arg3: memref<128x128xf32, #tpu.memory_space<vmem>>, %arg4: memref<128x1xi32, #tpu.memory_space<vmem>>, %arg5: memref<1x128xi32, #tpu.memory_space<vmem>>, %arg6: memref<128x1xf32, #tpu.memory_space<vmem>>, %arg7: memref<128x1xf32, #tpu.memory_space<vmem>>, %arg8: memref<128x1xf32, #tpu.memory_space<vmem>>, %arg9: memref<128x1xf32, #tpu.memory_space<vmem>>, %arg10: memref<128x1xf32, #tpu.memory_space<vmem>>) attributes {dimension_semantics = [#tpu.dimension_semantics<parallel>, #tpu.dimension_semantics<arbitrary>], iteration_bounds = array<i64: 1, 1>, scalar_prefetch = 0 : i64, scratch_operands = 4 : i64, tpu.core_type = #tpu.core_type<tc>, window_params = [{transform_indices = @transform_0, window_bounds = array<i64: 128, 128>}, {transform_indices = @transform_1, window_bounds = array<i64: 128, 128>}, {transform_indices = @transform_2, window_bounds = array<i64: 128, 1>}, {transform_indices = @transform_3, window_bounds = array<i64: 1, 128>}, {transform_indices = @transform_4, window_bounds = array<i64: 128, 1>}]} {
    %c0_i32 = arith.constant 0 : i32
    %0 = arith.cmpi eq, %arg1, %c0_i32 : i32
    %1 = arith.extui %0 : i1 to i32
    %c0_i32_0 = arith.constant 0 : i32
    %2 = arith.cmpi ne, %1, %c0_i32_0 : i32
    scf.if %2 {
      %cst_33 = arith.constant 0xFF800000 : f32
      %62 = vector.broadcast %cst_33 : f32 to vector<128x1xf32>
      %c0_34 = arith.constant 0 : index
      %c0_35 = arith.constant 0 : index
      %63 = vector.load %arg7[%c0_34, %c0_35] : memref<128x1xf32, #tpu.memory_space<vmem>>, vector<128x1xf32>
      tpu.vector_store %arg7[%c0_34, %c0_35], %62 {strides = array<i32>} : memref<128x1xf32, #tpu.memory_space<vmem>>, vector<128x1xf32>,
      %cst_36 = arith.constant 0.000000e+00 : f32
      %64 = vector.broadcast %cst_36 : f32 to vector<128x1xf32>
      %c0_37 = arith.constant 0 : index
      %c0_38 = arith.constant 0 : index
      %65 = vector.load %arg8[%c0_37, %c0_38] : memref<128x1xf32, #tpu.memory_space<vmem>>, vector<128x1xf32>
      tpu.vector_store %arg8[%c0_37, %c0_38], %64 {strides = array<i32>} : memref<128x1xf32, #tpu.memory_space<vmem>>, vector<128x1xf32>,
      %cst_39 = arith.constant 0.000000e+00 : f32
      %66 = vector.broadcast %cst_39 : f32 to vector<128x1xf32>
      %c0_40 = arith.constant 0 : index
      %c0_41 = arith.constant 0 : index
      %67 = vector.load %arg9[%c0_40, %c0_41] : memref<128x1xf32, #tpu.memory_space<vmem>>, vector<128x1xf32>
      tpu.vector_store %arg9[%c0_40, %c0_41], %66 {strides = array<i32>} : memref<128x1xf32, #tpu.memory_space<vmem>>, vector<128x1xf32>,
      %cst_42 = arith.constant 0.000000e+00 : f32
      %68 = vector.broadcast %cst_42 : f32 to vector<128x1xf32>
      %c0_43 = arith.constant 0 : index
      %c0_44 = arith.constant 0 : index
      %69 = vector.load %arg10[%c0_43, %c0_44] : memref<128x1xf32, #tpu.memory_space<vmem>>, vector<128x1xf32>
      tpu.vector_store %arg10[%c0_43, %c0_44], %68 {strides = array<i32>} : memref<128x1xf32, #tpu.memory_space<vmem>>, vector<128x1xf32>,
    } else {
    }
    %c0 = arith.constant 0 : index
    %c0_1 = arith.constant 0 : index
    %3 = vector.load %arg2[%c0, %c0_1] : memref<128x128xf32, #tpu.memory_space<vmem>>, vector<128x128xf32>
    %c0_2 = arith.constant 0 : index
    %c0_3 = arith.constant 0 : index
    %4 = vector.load %arg3[%c0_2, %c0_3] : memref<128x128xf32, #tpu.memory_space<vmem>>, vector<128x128xf32>
    %cst = arith.constant dense<0.000000e+00> : vector<128x128xf32>
    %5 = tpu.matmul %3, %4, %cst {dimension_numbers = #tpu.dot_dimension_numbers<[1], [1], [0], [0], [0, 0, 1, 0], [], []>} : vector<128x128xf32>, vector<128x128xf32>, vector<128x128xf32> -> vector<128x128xf32>
    %c128_i32 = arith.constant 128 : i32
    %6 = arith.muli %arg0, %c128_i32 : i32
    %7 = tpu.iota {dimensions = array<i32: 0>} : vector<128x1xi32>
    %8 = vector.broadcast %6 : i32 to vector<128x1xi32>
    %9 = arith.addi %8, %7 : vector<128x1xi32>
    %c128_i32_4 = arith.constant 128 : i32
    %10 = arith.muli %arg1, %c128_i32_4 : i32
    %11 = tpu.iota {dimensions = array<i32: 1>} : vector<1x128xi32>
    %12 = vector.broadcast %10 : i32 to vector<1x128xi32>
    %13 = arith.addi %12, %11 : vector<1x128xi32>
    %14 = vector.broadcast %9 : vector<128x1xi32> to vector<128x128xi32>
    %15 = vector.broadcast %13 : vector<1x128xi32> to vector<128x128xi32>
    %16 = arith.cmpi ne, %14, %15 : vector<128x128xi32>
    %c16_i32 = arith.constant 16 : i32
    %17 = vector.broadcast %c16_i32 : i32 to vector<1x128xi32>
    %18 = arith.cmpi slt, %13, %17 : vector<1x128xi32>
    %19 = vector.broadcast %18 : vector<1x128xi1> to vector<128x128xi1>
    %20 = arith.andi %16, %19 : vector<128x128xi1>
    %c0_5 = arith.constant 0 : index
    %c0_6 = arith.constant 0 : index
    %21 = vector.load %arg4[%c0_5, %c0_6] : memref<128x1xi32, #tpu.memory_space<vmem>>, vector<128x1xi32>
    %c0_7 = arith.constant 0 : index
    %c0_8 = arith.constant 0 : index
    %22 = vector.load %arg5[%c0_7, %c0_8] : memref<1x128xi32, #tpu.memory_space<vmem>>, vector<1x128xi32>
    %23 = vector.broadcast %21 : vector<128x1xi32> to vector<128x128xi32>
    %24 = vector.broadcast %22 : vector<1x128xi32> to vector<128x128xi32>
    %25 = arith.cmpi eq, %23, %24 : vector<128x128xi32>
    %26 = arith.andi %25, %20 : vector<128x128xi1>
    %c0_9 = arith.constant 0 : index
    %c0_10 = arith.constant 0 : index
    %27 = vector.load %arg7[%c0_9, %c0_10] : memref<128x1xf32, #tpu.memory_space<vmem>>, vector<128x1xf32>
    %cst_11 = arith.constant dense<0xFF800000> : vector<128xf32>
    %28 = vector.multi_reduction <maximumf>, %5, %cst_11 [1] : vector<128x128xf32> to vector<128xf32>
    %29 = vector.shape_cast %28 : vector<128xf32> to vector<128x1xf32>
    %30 = arith.maximumf %27, %29 : vector<128x1xf32>
    %31 = arith.subf %27, %30 : vector<128x1xf32>
    %32 = math.exp %31 : vector<128x1xf32>
    %33 = vector.broadcast %30 : vector<128x1xf32> to vector<128x128xf32>
    %34 = arith.subf %5, %33 : vector<128x128xf32>
    %35 = math.exp %34 : vector<128x128xf32>
    %cst_12 = arith.constant 0.000000e+00 : f32
    %36 = vector.broadcast %cst_12 : f32 to vector<128x128xf32>
    %37 = arith.select %20, %35, %36 : vector<128x128xi1>, vector<128x128xf32>
    %c0_13 = arith.constant 0 : index
    %c0_14 = arith.constant 0 : index
    %38 = vector.load %arg8[%c0_13, %c0_14] : memref<128x1xf32, #tpu.memory_space<vmem>>, vector<128x1xf32>
    %39 = arith.mulf %32, %38 : vector<128x1xf32>
    %cst_15 = arith.constant dense<0.000000e+00> : vector<128xf32>
    %40 = vector.multi_reduction <add>, %37, %cst_15 [1] : vector<128x128xf32> to vector<128xf32>
    %41 = vector.shape_cast %40 : vector<128xf32> to vector<128x1xf32>
    %42 = arith.addf %39, %41 : vector<128x1xf32>
    %c0_16 = arith.constant 0 : index
    %c0_17 = arith.constant 0 : index
    %43 = vector.load %arg8[%c0_16, %c0_17] : memref<128x1xf32, #tpu.memory_space<vmem>>, vector<128x1xf32>
    tpu.vector_store %arg8[%c0_16, %c0_17], %42 {strides = array<i32>} : memref<128x1xf32, #tpu.memory_space<vmem>>, vector<128x1xf32>,
    %c0_18 = arith.constant 0 : index
    %c0_19 = arith.constant 0 : index
    %44 = vector.load %arg9[%c0_18, %c0_19] : memref<128x1xf32, #tpu.memory_space<vmem>>, vector<128x1xf32>
    %cst_20 = arith.constant 0.000000e+00 : f32
    %45 = vector.broadcast %cst_20 : f32 to vector<128x128xf32>
    %46 = arith.select %26, %5, %45 : vector<128x128xi1>, vector<128x128xf32>
    %cst_21 = arith.constant dense<0.000000e+00> : vector<128xf32>
    %47 = vector.multi_reduction <add>, %46, %cst_21 [1] : vector<128x128xf32> to vector<128xf32>
    %48 = vector.shape_cast %47 : vector<128xf32> to vector<128x1xf32>
    %49 = arith.addf %44, %48 : vector<128x1xf32>
    %c0_22 = arith.constant 0 : index
    %c0_23 = arith.constant 0 : index
    %50 = vector.load %arg9[%c0_22, %c0_23] : memref<128x1xf32, #tpu.memory_space<vmem>>, vector<128x1xf32>
    tpu.vector_store %arg9[%c0_22, %c0_23], %49 {strides = array<i32>} : memref<128x1xf32, #tpu.memory_space<vmem>>, vector<128x1xf32>,
    %c0_24 = arith.constant 0 : index
    %c0_25 = arith.constant 0 : index
    %51 = vector.load %arg10[%c0_24, %c0_25] : memref<128x1xf32, #tpu.memory_space<vmem>>, vector<128x1xf32>
    %52 = arith.extui %26 : vector<128x128xi1> to vector<128x128xi32>
    %53 = arith.sitofp %52 : vector<128x128xi32> to vector<128x128xf32>
    %cst_26 = arith.constant dense<0.000000e+00> : vector<128xf32>
    %54 = vector.multi_reduction <add>, %53, %cst_26 [1] : vector<128x128xf32> to vector<128xf32>
    %55 = vector.shape_cast %54 : vector<128xf32> to vector<128x1xf32>
    %56 = arith.addf %51, %55 : vector<128x1xf32>
    %c0_27 = arith.constant 0 : index
    %c0_28 = arith.constant 0 : index
    %57 = vector.load %arg10[%c0_27, %c0_28] : memref<128x1xf32, #tpu.memory_space<vmem>>, vector<128x1xf32>
    tpu.vector_store %arg10[%c0_27, %c0_28], %56 {strides = array<i32>} : memref<128x1xf32, #tpu.memory_space<vmem>>, vector<128x1xf32>,
    %c0_29 = arith.constant 0 : index
    %c0_30 = arith.constant 0 : index
    %58 = vector.load %arg7[%c0_29, %c0_30] : memref<128x1xf32, #tpu.memory_space<vmem>>, vector<128x1xf32>
    tpu.vector_store %arg7[%c0_29, %c0_30], %30 {strides = array<i32>} : memref<128x1xf32, #tpu.memory_space<vmem>>, vector<128x1xf32>,
    %c0_i32_31 = arith.constant 0 : i32
    %59 = arith.cmpi eq, %arg1, %c0_i32_31 : i32
    %60 = arith.extui %59 : i1 to i32
    %c0_i32_32 = arith.constant 0 : i32
    %61 = arith.cmpi ne, %60, %c0_i32_32 : i32
    scf.if %61 {
      %c0_33 = arith.constant 0 : index
      %c0_34 = arith.constant 0 : index
      %62 = vector.load %arg10[%c0_33, %c0_34] : memref<128x1xf32, #tpu.memory_space<vmem>>, vector<128x1xf32>
      %63 = tpu.reciprocal %62 : vector<128x1xf32> -> vector<128x1xf32>
      %c0_35 = arith.constant 0 : index
      %c0_36 = arith.constant 0 : index
      %64 = vector.load %arg9[%c0_35, %c0_36] : memref<128x1xf32, #tpu.memory_space<vmem>>, vector<128x1xf32>
      %65 = arith.mulf %64, %63 : vector<128x1xf32>
      %c0_37 = arith.constant 0 : index
      %c0_38 = arith.constant 0 : index
      %66 = vector.load %arg7[%c0_37, %c0_38] : memref<128x1xf32, #tpu.memory_space<vmem>>, vector<128x1xf32>
      %c0_39 = arith.constant 0 : index
      %c0_40 = arith.constant 0 : index
      %67 = vector.load %arg8[%c0_39, %c0_40] : memref<128x1xf32, #tpu.memory_space<vmem>>, vector<128x1xf32>
      %68 = math.log %67 : vector<128x1xf32>
      %69 = arith.addf %66, %68 : vector<128x1xf32>
      %70 = arith.subf %65, %69 : vector<128x1xf32>
      %cst_41 = arith.constant -1.000000e+00 : f32
      %71 = vector.broadcast %cst_41 : f32 to vector<128x1xf32>
      %72 = arith.mulf %71, %70 : vector<128x1xf32>
      %c0_42 = arith.constant 0 : index
      %c0_43 = arith.constant 0 : index
      %73 = vector.load %arg6[%c0_42, %c0_43] : memref<128x1xf32, #tpu.memory_space<vmem>>, vector<128x1xf32>
      tpu.vector_store %arg6[%c0_42, %c0_43], %72 {strides = array<i32>} : memref<128x1xf32, #tpu.memory_space<vmem>>, vector<128x1xf32>,
    } else {
    }
    return
  }
  func.func @transform_0(%arg0: i32, %arg1: i32) -> (i32, i32) {
    %c0_i32 = arith.constant 0 : i32
    %c0_i32_0 = arith.constant 0 : i32
    return %arg0, %c0_i32 : i32, i32
  }
  func.func @transform_1(%arg0: i32, %arg1: i32) -> (i32, i32) {
    %c0_i32 = arith.constant 0 : i32
    %c0_i32_0 = arith.constant 0 : i32
    return %arg1, %c0_i32 : i32, i32
  }
  func.func @transform_2(%arg0: i32, %arg1: i32) -> (i32, i32) {
    %c0_i32 = arith.constant 0 : i32
    %c0_i32_0 = arith.constant 0 : i32
    return %arg0, %c0_i32 : i32, i32
  }
  func.func @transform_3(%arg0: i32, %arg1: i32) -> (i32, i32) {
    %c0_i32 = arith.constant 0 : i32
    %c0_i32_0 = arith.constant 0 : i32
    return %c0_i32, %arg1 : i32, i32
  }
  func.func @transform_4(%arg0: i32, %arg1: i32) -> (i32, i32) {
    %c0_i32 = arith.constant 0 : i32
    %c0_i32_0 = arith.constant 0 : i32
    return %arg0, %c0_i32 : i32, i32
  }
}

</mosaic_0001>

<bundles_post_ra>
// kernel: tpu_custom_call.1
= control target key start
LH: loop header
LB: loop body
LE: loop exit
PB: predicated region body
PF: predicated region fallthrough
CT: control target
= control target key end

     0   :  { %9 = vsyncpa [#allocation7], 0  ;;  %s1543_s15 = smov [#allocation6]   ;;  %s2586_s0 = inlined_call_operand.vmem [shape: f32[128,128], index: 0, kind: input, shape index: {}]   ;;  %s2587_s1 = inlined_call_operand.hbm [shape: f32[128,128], index: 1, kind: input, shape index: {}]   ;;  %s2588_s2 = inlined_call_operand.vmem [shape: s32[128,1], index: 2, kind: input, shape index: {}]   ;;  %s2589_s3 = inlined_call_operand.vmem [shape: s32[1,128], index: 3, kind: input, shape index: {}]   ;;  %s2590_s4 = inlined_call_operand.vmem [shape: f32[128,1], index: 4, kind: output, shape index: {}]  }
   0x1   :  { %s17_s16 = sshll.u32 %s1543_s15, 4  ;;  %s1519_s19 = scalar_lea.hbm %s2587_s1, 2048  ;;  %s18_s16 = int_to_ptr.vmem [resolvable:$true] %s17_s16 }
   0x2   :  { %p1520_p0 = scmp.ne.s32.totalorder %s2587_s1, %s1519_s19  ;;  %p1523_p1 = scmp.lt.u32.totalorder %s1519_s19, %s2587_s1 }
   0x4   :  { %p1525_p2 = pnand %p1523_p1, %p1520_p0 }
   0x6   :  { %1528 = shalt.err (!%p1525_p2)
}
   0x7   :  { %s1529_s24 = scalar_lea.vmem %s18_s16, 2048  ;;  %p1534_p4 = scmp.lt.s32.totalorder %s18_s16, %s18_s16 }
   0x8   :  { %p1530_p3 = scmp.ne.s32.totalorder %s18_s16, %s1529_s24  ;;  %p1535_p5 = scmp.lt.s32.totalorder %s1529_s24, %s1529_s24 }
   0xa   :  { %p1536_p6 = por %p1535_p5, %p1534_p4 }
   0xc   :  { %p1537_p7 = pnand %p1536_p6, %p1530_p3 }
   0xe   :  { %1540 = shalt.err (!%p1537_p7)
}
   0xf   :  { %s1544_s25 = smov 128   ;;  %s1545_s26 = smov 8  }
  0x10   :  { %23 = dma.hbm_to_vmem [thread:$0]  %s2587_s1, 2048, %s18_s16, [#allocation7], %s1544_s25, %s1544_s25, %s1545_s26  }
  0x11   :  { %1541 = dma.done.wait [#allocation7], 2048  }
  0x12   :  { %1542 = vsyncadd [#allocation7], 4294965248  ;;  %v1546_v0 = vmov 0   ;;  %v116_v1 = vld [vmem:[#allocation6] sm:$0xff]  ;;  %v117_v2 = vld [vmem:[#allocation6 + $0x8] sm:$0xff]  ;;  %v278_v50 = vlaneseq  ;;  %v2639_v57 = vmov 0 }
  0x13   :  { %1390 = vset.pattern.permute.xlu1 %v1546_v0  ;;  %1389 = vset.pattern.permute.xlu0 %v1546_v0  ;;  %v118_v3 = vld [vmem:[#allocation6 + $0x10] sm:$0xff]  ;;  %v1335_v4 = vpack.c.bf16 %v117_v2, %v116_v1  ;;  %v119_v5 = vld [vmem:[#allocation6 + $0x18] sm:$0xff]  ;;  %v100_v7 = vld [vmem:[%s2586_s0] sm:$0xff]  ;;  %v2641_v58 = vmov 0  ;;  %v2643_v60 = vmov 0  ;;  %v2645_v61 = vmov 0 }
  0x14   :  { %v1339_v6 = vpack.c.bf16 %v119_v5, %v118_v3  ;;  %v108_v8 = vld [vmem:[%s2586_s0 + $0x40] sm:$0xff]  ;;  %v121_v10 = vld [vmem:[#allocation6 + $0x28] sm:$0xff]  ;;  %1311 = vmatprep.mubr.f32.mxu0 %v100_v7  ;;  %v354_v12 = vld [vmem:[%s2588_s2 + $0x10] sm:$0xff]  ;;  %v1661_v51 = vshrl.u32 %v278_v50, 7  ;;  %v1664_v53 = vand.u32 127, %v278_v50  ;;  %v2591_v62 = vmov 0.0  }
  0x15   :  { %1336 = vmatprep.subr.bf16.mxu0 %v1335_v4  ;;  %1367 = vmatprep.subr.bf16.mxu1 %v1335_v4  ;;  %v120_v9 = vld [vmem:[#allocation6 + $0x20] sm:$0xff]  ;;  %v355_v14 = vld [vmem:[%s2588_s2 + $0x18] sm:$0xff]  ;;  %v122_v15 = vld [vmem:[#allocation6 + $0x30] sm:$0xff]  ;;  %v2647_v0 = vmov 0  ;;  %v2649_v3 = vmov 0  ;;  %vm2606_vm13 = vcmask 7168  }
  0x16   :  { %1338 = vmatpush3.bf16.xpose.msra.mxu0 %v1335_v4  ;;  %1375 = vmatpush3.bf16.xpose.msra.mxu1 %v1335_v4  ;;  %v1343_v11 = vpack.c.bf16 %v121_v10, %v120_v9  ;;  %v352_v13 = vld [vmem:[%s2588_s2] sm:$0xff]  ;;  %v123_v16 = vld [vmem:[#allocation6 + $0x38] sm:$0xff]  ;;  %v353_v17 = vld [vmem:[%s2588_s2 + $0x8] sm:$0xff]  ;;  %v281_v52 = vadd.s32 16, %v1661_v51  ;;  %vm317_vm1 = vcmp.ne.s32.totalorder %v1661_v51, %v1664_v53  ;;  %vm2623_vm2 = vcmp.lt.s32.totalorder %v1664_v53, 16  ;;  %84 = vst.msk [vmem:[#allocation5] sm:$0xff] %vm2606_vm13, %v2591_v62 }
  0x17   :  { %1340 = vmatprep.subr.bf16.mxu0 %v1339_v6  ;;  %1368 = vmatprep.subr.bf16.mxu1 %v1339_v6  ;;  %v357_v18 = vld [vmem:[%s2588_s2 + $0x28] sm:$0xff]  ;;  %v1347_v19 = vpack.c.bf16 %v123_v16, %v122_v15  ;;  %v359_v20 = vld [vmem:[%s2588_s2 + $0x38] sm:$0xff]  ;;  %v124_v21 = vld [vmem:[#allocation6 + $0x40] sm:$0xff]  ;;  %v280_v54 = vadd.s32 8, %v1661_v51  ;;  %52 = vst.msk [vmem:[#allocation3] sm:$0xff] %vm2606_vm13, %v2591_v62  ;;  %v1548_v5 = vmov -inf  }
  0x18   :  { %1323 = vmatprep.mubr.f32.mxu1 %v108_v8  ;;  %376 = vperm.xlu1 %1390, %v354_v12   ;;  %v125_v22 = vld [vmem:[#allocation6 + $0x48] sm:$0xff]  ;;  %v363_v25 = vld [vmem:[%s2588_s2 + $0x58] sm:$0xff]  ;;  %v126_v26 = vld [vmem:[#allocation6 + $0x50] sm:$0xff]  ;;  %vm319_vm0 = vcmp.ne.s32.totalorder %v281_v52, %v1664_v53  ;;  %53 = vst.msk [vmem:[#allocation3 + $0x8] sm:$0xff] %vm2606_vm13, %v2591_v62  ;;  %v284_v10 = vadd.s32 40, %v1661_v51 }
  0x19   :  { %370 = vperm.xlu0 %1389, %v352_v13   ;;  %v361_v23 = vld [vmem:[%s2588_s2 + $0x48] sm:$0xff]  ;;  %v1351_v24 = vpack.c.bf16 %v125_v22, %v124_v21  ;;  %v127_v27 = vld [vmem:[#allocation6 + $0x58] sm:$0xff]  ;;  %v364_v28 = vld [vmem:[%s2588_s2 + $0x60] sm:$0xff]  ;;  %vm318_vm6 = vcmp.ne.s32.totalorder %v280_v54, %v1664_v53  ;;  %54 = vst.msk [vmem:[#allocation3 + $0x10] sm:$0xff] %vm2606_vm13, %v2591_v62 }
  0x1a   :  { %v1355_v29 = vpack.c.bf16 %v127_v27, %v126_v26  ;;  %v128_v30 = vld [vmem:[#allocation6 + $0x60] sm:$0xff]  ;;  %v129_v31 = vld [vmem:[#allocation6 + $0x68] sm:$0xff]  ;;  %v130_v33 = vld [vmem:[#allocation6 + $0x70] sm:$0xff]  ;;  %55 = vst.msk [vmem:[#allocation3 + $0x18] sm:$0xff] %vm2606_vm13, %v2591_v62  ;;  %vm322_vm14 = vcmp.ne.s32.totalorder %v284_v10, %v1664_v53 }
  0x1b   :  { %v1359_v32 = vpack.c.bf16 %v129_v31, %v128_v30  ;;  %v131_v34 = vld [vmem:[#allocation6 + $0x78] sm:$0xff]  ;;  %v101_v36 = vld [vmem:[%s2586_s0 + $0x8] sm:$0xff]  ;;  %v102_v38 = vld [vmem:[%s2586_s0 + $0x10] sm:$0xff]  ;;  %56 = vst.msk [vmem:[#allocation3 + $0x20] sm:$0xff] %vm2606_vm13, %v2591_v62 }
  0x1c   :  { %379 = vperm.xlu1 %1390, %v355_v14   ;;  %v1363_v35 = vpack.c.bf16 %v131_v34, %v130_v33  ;;  %v109_v37 = vld [vmem:[%s2586_s0 + $0x48] sm:$0xff]  ;;  %v110_v39 = vld [vmem:[%s2586_s0 + $0x50] sm:$0xff]  ;;  %v103_v40 = vld [vmem:[%s2586_s0 + $0x18] sm:$0xff]  ;;  %57 = vst.msk [vmem:[#allocation3 + $0x28] sm:$0xff] %vm2606_vm13, %v2591_v62 }
  0x1d   :  { %373 = vperm.xlu0 %1389, %v353_v17   ;;  %v111_v41 = vld [vmem:[%s2586_s0 + $0x58] sm:$0xff]  ;;  %v104_v42 = vld [vmem:[%s2586_s0 + $0x20] sm:$0xff]  ;;  %v105_v44 = vld [vmem:[%s2586_s0 + $0x28] sm:$0xff]  ;;  %58 = vst.msk [vmem:[#allocation3 + $0x30] sm:$0xff] %vm2606_vm13, %v2591_v62 }
  0x1e   :  { %1342 = vmatpush3.bf16.xpose.msra.mxu0 %v1339_v6  ;;  %1376 = vmatpush3.bf16.xpose.msra.mxu1 %v1339_v6  ;;  %v112_v43 = vld [vmem:[%s2586_s0 + $0x60] sm:$0xff]  ;;  %v113_v45 = vld [vmem:[%s2586_s0 + $0x68] sm:$0xff]  ;;  %v106_v46 = vld [vmem:[%s2586_s0 + $0x30] sm:$0xff]  ;;  %59 = vst.msk [vmem:[#allocation3 + $0x38] sm:$0xff] %vm2606_vm13, %v2591_v62 }
  0x1f   :  { %1344 = vmatprep.subr.bf16.mxu0 %v1343_v11  ;;  %1369 = vmatprep.subr.bf16.mxu1 %v1343_v11  ;;  %v114_v47 = vld [vmem:[%s2586_s0 + $0x70] sm:$0xff]  ;;  %v107_v48 = vld [vmem:[%s2586_s0 + $0x38] sm:$0xff]  ;;  %v1674_v55 = vld [vmem:[%s2589_s3] ss:$0 sm:$0xff]  ;;  %60 = vst.msk [vmem:[#allocation3 + $0x40] sm:$0xff] %vm2606_vm13, %v2591_v62 }
  0x20   :  { %385 = vperm.xlu1 %1390, %v357_v18   ;;  %v115_v49 = vld [vmem:[%s2586_s0 + $0x78] sm:$0xff]  ;;  %vm1679_vm4 = vmand %vm319_vm0, %vm2623_vm2  ;;  %61 = vst.msk [vmem:[#allocation3 + $0x48] sm:$0xff] %vm2606_vm13, %v2591_v62  ;;  %v365_v50 = vld [vmem:[%s2588_s2 + $0x68] sm:$0xff] }
  0x21   :  { %v2640_v57 = vsel %vm1679_vm4, 4294967295, %v2639_v57  ;;  %vm1685_vm5 = vmand %vm317_vm1, %vm2623_vm2  ;;  %62 = vst.msk [vmem:[#allocation3 + $0x50] sm:$0xff] %vm2606_vm13, %v2591_v62  ;;  %v366_v52 = vld [vmem:[%s2588_s2 + $0x70] sm:$0xff] }
  0x22   :  { %v2642_v58 = vsel %vm1685_vm5, 4294967295, %v2641_v58  ;;  %vm1708_vm10 = vmand %vm318_vm6, %vm2623_vm2  ;;  %63 = vst.msk [vmem:[#allocation3 + $0x58] sm:$0xff] %vm2606_vm13, %v2591_v62 }
  0x23   :  { %v2648_v0 = vsel %vm1708_vm10, 4294967295, %v2647_v0  ;;  %64 = vst.msk [vmem:[#allocation3 + $0x60] sm:$0xff] %vm2606_vm13, %v2591_v62  ;;  %65 = vst.msk [vmem:[#allocation3 + $0x68] sm:$0xff] %vm2606_vm13, %v2591_v62 }
  0x24   :  { %391 = vperm.xlu1 %1390, %v359_v20   ;;  %66 = vst.msk [vmem:[#allocation3 + $0x70] sm:$0xff] %vm2606_vm13, %v2591_v62  ;;  %67 = vst.msk [vmem:[#allocation3 + $0x78] sm:$0xff] %vm2606_vm13, %v2591_v62  ;;  %v2651_v20 = vmov 0 }
  0x25   :  { %68 = vst.msk [vmem:[#allocation4] sm:$0xff] %vm2606_vm13, %v2591_v62  ;;  %69 = vst.msk [vmem:[#allocation4 + $0x8] sm:$0xff] %vm2606_vm13, %v2591_v62 }
  0x26   :  { %1346 = vmatpush3.bf16.xpose.msra.mxu0 %v1343_v11  ;;  %1377 = vmatpush3.bf16.xpose.msra.mxu1 %v1343_v11  ;;  %70 = vst.msk [vmem:[#allocation4 + $0x10] sm:$0xff] %vm2606_vm13, %v2591_v62  ;;  %71 = vst.msk [vmem:[#allocation4 + $0x18] sm:$0xff] %vm2606_vm13, %v2591_v62 }
  0x27   :  { %1348 = vmatprep.subr.bf16.mxu0 %v1347_v19  ;;  %1370 = vmatprep.subr.bf16.mxu1 %v1347_v19  ;;  %72 = vst.msk [vmem:[#allocation4 + $0x20] sm:$0xff] %vm2606_vm13, %v2591_v62  ;;  %73 = vst.msk [vmem:[#allocation4 + $0x28] sm:$0xff] %vm2606_vm13, %v2591_v62 }
  0x28   :  { %397 = vperm.xlu1 %1390, %v361_v23   ;;  %74 = vst.msk [vmem:[#allocation4 + $0x30] sm:$0xff] %vm2606_vm13, %v2591_v62  ;;  %75 = vst.msk [vmem:[#allocation4 + $0x38] sm:$0xff] %vm2606_vm13, %v2591_v62 }
  0x29   :  { %76 = vst.msk [vmem:[#allocation4 + $0x40] sm:$0xff] %vm2606_vm13, %v2591_v62  ;;  %77 = vst.msk [vmem:[#allocation4 + $0x48] sm:$0xff] %vm2606_vm13, %v2591_v62 }
  0x2a   :  { %78 = vst.msk [vmem:[#allocation4 + $0x50] sm:$0xff] %vm2606_vm13, %v2591_v62  ;;  %79 = vst.msk [vmem:[#allocation4 + $0x58] sm:$0xff] %vm2606_vm13, %v2591_v62 }
  0x2b   :  { %80 = vst.msk [vmem:[#allocation4 + $0x60] sm:$0xff] %vm2606_vm13, %v2591_v62  ;;  %81 = vst.msk [vmem:[#allocation4 + $0x68] sm:$0xff] %vm2606_vm13, %v2591_v62 }
  0x2c   :  { %403 = vperm.xlu1 %1390, %v363_v25   ;;  %82 = vst.msk [vmem:[#allocation4 + $0x70] sm:$0xff] %vm2606_vm13, %v2591_v62  ;;  %83 = vst.msk [vmem:[#allocation4 + $0x78] sm:$0xff] %vm2606_vm13, %v2591_v62  ;;  %v2653_v25 = vmov 0 }
  0x2d   :  { %85 = vst.msk [vmem:[#allocation5 + $0x8] sm:$0xff] %vm2606_vm13, %v2591_v62  ;;  %86 = vst.msk [vmem:[#allocation5 + $0x10] sm:$0xff] %vm2606_vm13, %v2591_v62 }
  0x2e   :  { %1350 = vmatpush3.bf16.xpose.msra.mxu0 %v1347_v19  ;;  %1378 = vmatpush3.bf16.xpose.msra.mxu1 %v1347_v19  ;;  %87 = vst.msk [vmem:[#allocation5 + $0x18] sm:$0xff] %vm2606_vm13, %v2591_v62  ;;  %88 = vst.msk [vmem:[#allocation5 + $0x20] sm:$0xff] %vm2606_vm13, %v2591_v62 }
  0x2f   :  { %1352 = vmatprep.subr.bf16.mxu0 %v1351_v24  ;;  %1371 = vmatprep.subr.bf16.mxu1 %v1351_v24  ;;  %89 = vst.msk [vmem:[#allocation5 + $0x28] sm:$0xff] %vm2606_vm13, %v2591_v62  ;;  %90 = vst.msk [vmem:[#allocation5 + $0x30] sm:$0xff] %vm2606_vm13, %v2591_v62 }
  0x30   :  { %406 = vperm.xlu1 %1390, %v364_v28   ;;  %91 = vst.msk [vmem:[#allocation5 + $0x38] sm:$0xff] %vm2606_vm13, %v2591_v62  ;;  %92 = vst.msk [vmem:[#allocation5 + $0x40] sm:$0xff] %vm2606_vm13, %v2591_v62 }
  0x31   :  { %93 = vst.msk [vmem:[#allocation5 + $0x48] sm:$0xff] %vm2606_vm13, %v2591_v62  ;;  %94 = vst.msk [vmem:[#allocation5 + $0x50] sm:$0xff] %vm2606_vm13, %v2591_v62 }
  0x32   :  { %95 = vst.msk [vmem:[#allocation5 + $0x58] sm:$0xff] %vm2606_vm13, %v2591_v62  ;;  %96 = vst.msk [vmem:[#allocation5 + $0x60] sm:$0xff] %vm2606_vm13, %v2591_v62 }
  0x33   :  { %97 = vst.msk [vmem:[#allocation5 + $0x68] sm:$0xff] %vm2606_vm13, %v2591_v62  ;;  %98 = vst.msk [vmem:[#allocation5 + $0x70] sm:$0xff] %vm2606_vm13, %v2591_v62 }
  0x34   :  { %99 = vst.msk [vmem:[#allocation5 + $0x78] sm:$0xff] %vm2606_vm13, %v2591_v62  ;;  %45 = vst.msk [vmem:[#allocation2 + $0x48] sm:$0xff] %vm2606_vm13, %v1548_v5  ;;  %v903_v33 = vld [vmem:[#allocation5 + $0x8] sm:$0xff]  ;;  %v904_v34 = vld [vmem:[#allocation5 + $0x10] sm:$0xff] }
  0x35   :  { %36 = vst.msk [vmem:[#allocation2] sm:$0xff] %vm2606_vm13, %v1548_v5  ;;  %37 = vst.msk [vmem:[#allocation2 + $0x8] sm:$0xff] %vm2606_vm13, %v1548_v5 }
  0x36   :  { %1354 = vmatpush3.bf16.xpose.msra.mxu0 %v1351_v24  ;;  %1379 = vmatpush3.bf16.xpose.msra.mxu1 %v1351_v24  ;;  %38 = vst.msk [vmem:[#allocation2 + $0x10] sm:$0xff] %vm2606_vm13, %v1548_v5  ;;  %39 = vst.msk [vmem:[#allocation2 + $0x18] sm:$0xff] %vm2606_vm13, %v1548_v5  ;;  %v902_v24 = vld [vmem:[#allocation5] sm:$0xff] }
  0x37   :  { %1356 = vmatprep.subr.bf16.mxu0 %v1355_v29  ;;  %1372 = vmatprep.subr.bf16.mxu1 %v1355_v29  ;;  %40 = vst.msk [vmem:[#allocation2 + $0x20] sm:$0xff] %vm2606_vm13, %v1548_v5  ;;  %41 = vst.msk [vmem:[#allocation2 + $0x28] sm:$0xff] %vm2606_vm13, %v1548_v5 }
  0x38   :  { %42 = vst.msk [vmem:[#allocation2 + $0x30] sm:$0xff] %vm2606_vm13, %v1548_v5  ;;  %43 = vst.msk [vmem:[#allocation2 + $0x38] sm:$0xff] %vm2606_vm13, %v1548_v5 }
  0x39   :  { %44 = vst.msk [vmem:[#allocation2 + $0x40] sm:$0xff] %vm2606_vm13, %v1548_v5  ;;  %46 = vst.msk [vmem:[#allocation2 + $0x50] sm:$0xff] %vm2606_vm13, %v1548_v5 }
  0x3a   :  { %47 = vst.msk [vmem:[#allocation2 + $0x58] sm:$0xff] %vm2606_vm13, %v1548_v5  ;;  %48 = vst.msk [vmem:[#allocation2 + $0x60] sm:$0xff] %vm2606_vm13, %v1548_v5 }
  0x3b   :  { %49 = vst.msk [vmem:[#allocation2 + $0x68] sm:$0xff] %vm2606_vm13, %v1548_v5  ;;  %50 = vst.msk [vmem:[#allocation2 + $0x70] sm:$0xff] %vm2606_vm13, %v1548_v5  ;;  %v1953_v54 = vld [vmem:[#allocation2 + $0x48] sm:$0xff] }
  0x3c   :  { %51 = vst.msk [vmem:[#allocation2 + $0x78] sm:$0xff] %vm2606_vm13, %v1548_v5  ;;  %vm1868_vm0 = vmand %vm322_vm14, %vm2623_vm2  ;;  %v1965_v5 = vld [vmem:[#allocation2] sm:$0xff] }
  0x3d   :  { %v2652_v20 = vsel %vm1868_vm0, 4294967295, %v2651_v20  ;;  %2659 = vst [vmem:[#allocation9_spill] sm:$0xff] %v1965_v5 }
  0x3e   :  { %1358 = vmatpush3.bf16.xpose.msra.mxu0 %v1355_v29  ;;  %1380 = vmatpush3.bf16.xpose.msra.mxu1 %v1355_v29 }
  0x3f   :  { %1360 = vmatprep.subr.bf16.mxu0 %v1359_v32  ;;  %1373 = vmatprep.subr.bf16.mxu1 %v1359_v32  ;;  %v2080_v28 = vld [vmem:[#allocation2 + $0x38] sm:$0xff] }
  0x40   :  { %2679 = vst [vmem:[#allocation29_spill] sm:$0xff] %v2080_v28 }
  0x46   :  { %1362 = vmatpush3.bf16.xpose.msra.mxu0 %v1359_v32  ;;  %1381 = vmatpush3.bf16.xpose.msra.mxu1 %v1359_v32 }
  0x47   :  { %1364 = vmatprep.subr.bf16.mxu0 %v1363_v35  ;;  %1374 = vmatprep.subr.bf16.mxu1 %v1363_v35 }
  0x4e   :  { %1366 = vmatpush3.bf16.xpose.msra.mxu0 %v1363_v35  ;;  %1382 = vmatpush3.bf16.xpose.msra.mxu1 %v1363_v35 }
  0x55   :  { %1312 = vmatmul.mubr.f32.vlgmr.msra.gmra.mrb[0].mxu0 %v101_v36  ;;  %1324 = vmatmul.mubr.f32.vlgmr.msra.gmra.mrb[0].mxu1 %v109_v37 }
  0x56   :  { %1314 = vmatprep.mubr.f32.mxu0 %v102_v38  ;;  %1326 = vmatprep.mubr.f32.mxu1 %v110_v39 }
  0x59   :  { %1315 = vmatmul.mubr.f32.gmra.mrb[2].mxu0 %v103_v40  ;;  %1327 = vmatmul.mubr.f32.gmra.mrb[2].mxu1 %v111_v41  ;;  %v282_v41 = vadd.s32 24, %v1661_v51 }
  0x5a   :  { %1317 = vmatprep.mubr.f32.mxu0 %v104_v42  ;;  %1329 = vmatprep.mubr.f32.mxu1 %v112_v43  ;;  %v2655_v42 = vmov 0  ;;  %v2657_v43 = vmov 0 }
  0x5d   :  { %1318 = vmatmul.mubr.f32.gmra.mrb[4].mxu0 %v105_v44  ;;  %1330 = vmatmul.mubr.f32.gmra.mrb[4].mxu1 %v113_v45  ;;  %v367_v45 = vld [vmem:[%s2588_s2 + $0x78] sm:$0xff] }
  0x5e   :  { %1320 = vmatprep.mubr.f32.mxu0 %v106_v46  ;;  %1332 = vmatprep.mubr.f32.mxu1 %v114_v47  ;;  %v356_v46 = vld [vmem:[%s2588_s2 + $0x20] sm:$0xff]  ;;  %v358_v47 = vld [vmem:[%s2588_s2 + $0x30] sm:$0xff] }
  0x61   :  { %1321 = vmatmul.mubr.f32.gmra.mrb[6].mxu0 %v107_v48  ;;  %1333 = vmatmul.mubr.f32.gmra.mrb[6].mxu1 %v115_v49  ;;  %v360_v48 = vld [vmem:[%s2588_s2 + $0x40] sm:$0xff]  ;;  %v362_v49 = vld [vmem:[%s2588_s2 + $0x50] sm:$0xff] }
  0x97   :  { %v377_v56 = vpop.permute.xlu1 %376 }
  0x98   :  { %vm423_vm3 = vcmp.eq.s32.totalorder %v377_v56, %v1674_v55  ;;  %v371_v59 = vpop.permute.xlu0 %370  ;;  %v1955_v56 = vld [vmem:[#allocation2 + $0x8] sm:$0xff] }
  0x99   :  { %vm421_vm7 = vcmp.eq.s32.totalorder %v371_v59, %v1674_v55  ;;  %vm1693_vm8 = vmand %vm423_vm3, %vm1679_vm4  ;;  %vm320_vm3 = vcmp.ne.s32.totalorder %v282_v41, %v1664_v53 }
  0x9a   :  { %v2644_v60 = vsel %vm1693_vm8, 4294967295, %v2643_v60  ;;  %vm1699_vm9 = vmand %vm421_vm7, %vm1685_vm5  ;;  %v1233_v2 = vsel %vm1693_vm8, 1.0, %v2591_v62 }
  0x9b   :  { %v2646_v61 = vsel %vm1699_vm9, 4294967295, %v2645_v61  ;;  %v1231_v63 = vsel %vm1699_vm9, 1.0, %v2591_v62  ;;  %v380_v6 = vpop.permute.xlu1 %379  ;;  %vm1918_vm7 = vmand %vm320_vm3, %vm2623_vm2 }
  0x9c   :  { %v374_v1 = vpop.permute.xlu0 %373  ;;  %950 = vadd.xlane.f32.xlu1 %v1231_v63  ;;  %vm424_vm6 = vcmp.eq.s32.totalorder %v380_v6, %v1674_v55  ;;  %v2656_v42 = vsel %vm1918_vm7, 4294967295, %v2655_v42  ;;  %v294_v6 = vadd.s32 120, %v1661_v51 }
  0x9d   :  { %vm422_vm11 = vcmp.eq.s32.totalorder %v374_v1, %v1674_v55 }
  0x9e   :  { %vm1718_vm12 = vmand %vm422_vm11, %vm1708_vm10  ;;  %vm332_vm14 = vcmp.ne.s32.totalorder %v294_v6, %v1664_v53  ;;  %v2680_v6 = vmov 0 }
  0x9f   :  { %v2650_v3 = vsel %vm1718_vm12, 4294967295, %v2649_v3  ;;  %v1232_v4 = vsel %vm1718_vm12, 1.0, %v2591_v62  ;;  %v386_v7 = vpop.permute.xlu1 %385  ;;  %vm1925_vm11 = vmand %vm424_vm6, %vm1918_vm7 }
  0xa0   :  { %952 = vadd.xlane.f32.xlu0 %v1232_v4  ;;  %954 = vadd.xlane.f32.xlu1 %v1233_v2  ;;  %vm426_vm15 = vcmp.eq.s32.totalorder %v386_v7, %v1674_v55  ;;  %v2658_v43 = vsel %vm1925_vm11, 4294967295, %v2657_v43  ;;  %v1234_v44 = vsel %vm1925_vm11, 1.0, %v2591_v62  ;;  %v1963_v4 = vld [vmem:[#allocation2 + $0x40] sm:$0xff]  ;;  %v2061_v7 = vld [vmem:[#allocation2 + $0x68] sm:$0xff] }
  0xa1   :  { %vm1880_vm1 = vmand %vm426_vm15, %vm1868_vm0  ;;  %2676 = vst [vmem:[#allocation26_spill] sm:$0xff] %v2061_v7 }
  0xa2   :  { %v2654_v25 = vsel %vm1880_vm1, 4294967295, %v2653_v25  ;;  %vm2092_vm15 = vmand %vm332_vm14, %vm2623_vm2 }
  0xa3   :  { %v1837_v8 = vpop.permute.xlu1 %391  ;;  %v2681_v6 = vsel %vm2092_vm15, 4294967295, %v2680_v6 }
  0xa7   :  { %v1839_v9 = vpop.permute.xlu1 %397 }
  0xab   :  { %v1842_v11 = vpop.permute.xlu1 %403 }
  0xaf   :  { %v1872_v21 = vpop.permute.xlu1 %406 }
 0x128   :  { %v1844_v12 = vpop.f32.mrb[0].mxu0  ;;  %v1846_v13 = vpop.f32.mrb[0].mxu1 }
 0x129   :  { %487 = vmax.xlane.f32.xlu0 %v1846_v13  ;;  %v1849_v14 = vpop.f32.mrb[1].mxu1  ;;  %471 = vmax.xlane.f32.xlu1 %v1844_v12  ;;  %v1852_v15 = vpop.f32.mrb[1].mxu0 }
 0x12a   :  { %v951_v29 = vpop.xlane.xlu1 %950 }
 0x12b   :  { %v982_v30 = vadd.f32 %v951_v29, %v902_v24 }
 0x12c   :  { %v1855_v16 = vpop.f32.mrb[2].mxu0  ;;  %v1857_v17 = vpop.f32.mrb[2].mxu1 }
 0x12d   :  { %485 = vmax.xlane.f32.xlu1 %v1849_v14  ;;  %469 = vmax.xlane.f32.xlu0 %v1852_v15  ;;  %v1862_v18 = vpop.f32.mrb[3].mxu0  ;;  %v1864_v19 = vpop.f32.mrb[3].mxu1  ;;  %998 = vst.msk [vmem:[#allocation5] sm:$0xff] %vm2606_vm13, %v982_v30 }
 0x12e   :  { %v953_v37 = vpop.xlane.xlu0 %952  ;;  %v955_v38 = vpop.xlane.xlu1 %954 }
 0x12f   :  { %v983_v39 = vadd.f32 %v953_v37, %v903_v33  ;;  %v984_v40 = vadd.f32 %v955_v38, %v904_v34  ;;  %v1982_v33 = vld [vmem:[#allocation2 + $0x50] sm:$0xff]  ;;  %v1984_v34 = vld [vmem:[#allocation2 + $0x18] sm:$0xff] }
 0x130   :  { %v1874_v22 = vpop.f32.mrb[4].mxu0  ;;  %v1876_v23 = vpop.f32.mrb[4].mxu1  ;;  %2661 = vst [vmem:[#allocation11_spill] sm:$0xff] %v1982_v33  ;;  %2662 = vst [vmem:[#allocation12_spill] sm:$0xff] %v1984_v34  ;;  %v2063_v38 = vld [vmem:[#allocation2 + $0x70] sm:$0xff] }
 0x131   :  { %v1884_v26 = vpop.f32.mrb[5].mxu1  ;;  %489 = vmax.xlane.f32.xlu1 %v1864_v19  ;;  %475 = vmax.xlane.f32.xlu0 %v1855_v16  ;;  %v1888_v27 = vpop.f32.mrb[5].mxu0  ;;  %999 = vst.msk [vmem:[#allocation5 + $0x8] sm:$0xff] %vm2606_vm13, %v983_v39  ;;  %1000 = vst.msk [vmem:[#allocation5 + $0x10] sm:$0xff] %vm2606_vm13, %v984_v40 }
 0x132   :  { %2677 = vst [vmem:[#allocation27_spill] sm:$0xff] %v2063_v38 }
 0x134   :  { %v1893_v31 = vpop.f32.mrb[6].mxu0  ;;  %v1895_v32 = vpop.f32.mrb[6].mxu1 }
 0x135   :  { %491 = vmax.xlane.f32.xlu0 %v1857_v17  ;;  %477 = vmax.xlane.f32.xlu1 %v1888_v27  ;;  %v1899_v35 = vpop.f32.mrb[7].mxu0  ;;  %v1901_v36 = vpop.f32.mrb[7].mxu1 }
 0x139   :  { %473 = vmax.xlane.f32.xlu0 %v1862_v18  ;;  %493 = vmax.xlane.f32.xlu1 %v1884_v26 }
 0x13d   :  { %479 = vmax.xlane.f32.xlu0 %v1874_v22  ;;  %481 = vmax.xlane.f32.xlu1 %v1899_v35 }
 0x141   :  { %495 = vmax.xlane.f32.xlu0 %v1876_v23  ;;  %497 = vmax.xlane.f32.xlu1 %v1901_v36 }
 0x145   :  { %483 = vmax.xlane.f32.xlu0 %v1893_v31 }
 0x149   :  { %499 = vmax.xlane.f32.xlu0 %v1895_v32 }
 0x14d   :  { %956 = vadd.xlane.f32.xlu0 %v1234_v44 }
 0x152   :  { %415 = vperm.xlu1 %1390, %v367_v45   ;;  %v2002_v45 = vld [vmem:[#allocation2 + $0x58] sm:$0xff] }
 0x153   :  { %2665 = vst [vmem:[#allocation15_spill] sm:$0xff] %v2002_v45 }
 0x163   :  { %382 = vperm.xlu0 %1389, %v356_v46   ;;  %v2004_v46 = vld [vmem:[#allocation2 + $0x20] sm:$0xff] }
 0x164   :  { %2666 = vst [vmem:[#allocation16_spill] sm:$0xff] %v2004_v46 }
 0x167   :  { %388 = vperm.xlu0 %1389, %v358_v47  }
 0x16b   :  { %394 = vperm.xlu0 %1389, %v360_v48   ;;  %v2042_v48 = vld [vmem:[#allocation2 + $0x30] sm:$0xff] }
 0x16c   :  { %2674 = vst [vmem:[#allocation24_spill] sm:$0xff] %v2042_v48 }
 0x16f   :  { %400 = vperm.xlu0 %1389, %v362_v49  }
 0x173   :  { %409 = vperm.xlu0 %1389, %v365_v50  }
 0x177   :  { %412 = vperm.xlu0 %1389, %v366_v52  }
 0x1b6   :  { %v488_v59 = vpop.xlane.xlu0 %487  ;;  %v472_v63 = vpop.xlane.xlu1 %471 }
 0x1b7   :  { %v1958_v1 = vmax.f32 %v1953_v54, %v488_v59  ;;  %v1961_v2 = vmax.f32 %v1955_v56, %v472_v63  ;;  %v2021_v63 = vld [vmem:[#allocation2 + $0x10] sm:$0xff] }
 0x1b8   :  { %2669 = vst [vmem:[#allocation19_spill] sm:$0xff] %v2021_v63 }
 0x1b9   :  { %1023 = vst.msk [vmem:[#allocation2 + $0x48] sm:$0xff] %vm2606_vm13, %v1958_v1  ;;  %1015 = vst.msk [vmem:[#allocation2 + $0x8] sm:$0xff] %vm2606_vm13, %v1961_v2  ;;  %572 = vperm.xlu1 %1390, %v1961_v2  }
 0x1ba   :  { %v486_v10 = vpop.xlane.xlu1 %485  ;;  %v470_v24 = vpop.xlane.xlu0 %469 }
 0x1bb   :  { %v1977_v29 = vmax.f32 %v1963_v4, %v486_v10  ;;  %v1980_v30 = vmax.f32 %v1965_v5, %v470_v24  ;;  %v2023_v10 = vld [vmem:[#allocation2 + $0x60] sm:$0xff]  ;;  %v2040_v24 = vld [vmem:[#allocation2 + $0x28] sm:$0xff] }
 0x1bc   :  { %2670 = vst [vmem:[#allocation20_spill] sm:$0xff] %v2023_v10  ;;  %2673 = vst [vmem:[#allocation23_spill] sm:$0xff] %v2040_v24 }
 0x1bd   :  { %2660 = vst [vmem:[#allocation10_spill] sm:$0xff] %v1980_v30  ;;  %1022 = vst.msk [vmem:[#allocation2 + $0x40] sm:$0xff] %vm2606_vm13, %v1977_v29  ;;  %607 = vperm.xlu0 %1389, %v1977_v29   ;;  %612 = vperm.xlu1 %1390, %v1958_v1  }
 0x1be   :  { %1014 = vst.msk [vmem:[#allocation2] sm:$0xff] %vm2606_vm13, %v1980_v30  ;;  %v490_v39 = vpop.xlane.xlu1 %489  ;;  %v476_v40 = vpop.xlane.xlu0 %475 }
 0x1bf   :  { %v1997_v41 = vmax.f32 %v1982_v33, %v490_v39  ;;  %v2000_v44 = vmax.f32 %v1984_v34, %v476_v40  ;;  %v291_v34 = vadd.s32 96, %v1661_v51 }
 0x1c1   :  { %2663 = vst [vmem:[#allocation13_spill] sm:$0xff] %v1997_v41  ;;  %2664 = vst [vmem:[#allocation14_spill] sm:$0xff] %v2000_v44  ;;  %567 = vperm.xlu1 %1390, %v1980_v30  }
 0x1c2   :  { %1024 = vst.msk [vmem:[#allocation2 + $0x50] sm:$0xff] %vm2606_vm13, %v1997_v41  ;;  %1017 = vst.msk [vmem:[#allocation2 + $0x18] sm:$0xff] %vm2606_vm13, %v2000_v44  ;;  %v492_v49 = vpop.xlane.xlu0 %491  ;;  %v478_v50 = vpop.xlane.xlu1 %477 }
 0x1c3   :  { %v2016_v52 = vmax.f32 %v2002_v45, %v492_v49  ;;  %v2019_v59 = vmax.f32 %v2004_v46, %v478_v50 }
 0x1c5   :  { %2667 = vst [vmem:[#allocation17_spill] sm:$0xff] %v2016_v52  ;;  %2668 = vst [vmem:[#allocation18_spill] sm:$0xff] %v2019_v59  ;;  %582 = vperm.xlu1 %1390, %v2000_v44  }
 0x1c6   :  { %1025 = vst.msk [vmem:[#allocation2 + $0x58] sm:$0xff] %vm2606_vm13, %v2016_v52  ;;  %1018 = vst.msk [vmem:[#allocation2 + $0x20] sm:$0xff] %vm2606_vm13, %v2019_v59  ;;  %v474_v40 = vpop.xlane.xlu0 %473  ;;  %v494_v49 = vpop.xlane.xlu1 %493 }
 0x1c7   :  { %v2035_v50 = vmax.f32 %v2021_v63, %v474_v40  ;;  %v2038_v47 = vmax.f32 %v2023_v10, %v494_v49  ;;  %v905_v10 = vld [vmem:[#allocation5 + $0x18] sm:$0xff]  ;;  %v288_v63 = vadd.s32 72, %v1661_v51 }
 0x1c9   :  { %2671 = vst [vmem:[#allocation21_spill] sm:$0xff] %v2035_v50  ;;  %2672 = vst [vmem:[#allocation22_spill] sm:$0xff] %v2038_v47  ;;  %577 = vperm.xlu0 %1389, %v2035_v50   ;;  %622 = vperm.xlu1 %1390, %v2016_v52   ;;  %vm326_vm0 = vcmp.ne.s32.totalorder %v288_v63, %v1664_v53  ;;  %v2693_v63 = vmov 0  ;;  %v2703_v52 = vmov 0.0  }
 0x1ca   :  { %1016 = vst.msk [vmem:[#allocation2 + $0x10] sm:$0xff] %vm2606_vm13, %v2035_v50  ;;  %1026 = vst.msk [vmem:[#allocation2 + $0x60] sm:$0xff] %vm2606_vm13, %v2038_v47  ;;  %v480_v40 = vpop.xlane.xlu0 %479  ;;  %v482_v49 = vpop.xlane.xlu1 %481  ;;  %v286_v50 = vadd.s32 56, %v1661_v51  ;;  %v1236_v45 = vsel %vm1880_vm1, 1.0, %v2703_v52  ;;  %vm2708_vm1 = vcmp.lt.s32.totalorder %v1664_v53, 16 }
 0x1cb   :  { %v2056_v37 = vmax.f32 %v2040_v24, %v480_v40  ;;  %v2059_v39 = vmax.f32 %v2042_v48, %v482_v49  ;;  %vm2159_vm5 = vmand %vm326_vm0, %vm2623_vm2  ;;  %vm430_vm0 = vcmp.eq.s32.totalorder %v1839_v9, %v1674_v55  ;;  %v2701_v9 = vmov 0 }
 0x1cc   :  { %vm324_vm4 = vcmp.ne.s32.totalorder %v286_v50, %v1664_v53  ;;  %v2694_v63 = vsel %vm2159_vm5, 4294967295, %v2693_v63  ;;  %v293_v50 = vadd.s32 112, %v1661_v51 }
 0x1cd   :  { %2675 = vst [vmem:[#allocation25_spill] sm:$0xff] %v2056_v37  ;;  %1019 = vst.msk [vmem:[#allocation2 + $0x28] sm:$0xff] %vm2606_vm13, %v2056_v37  ;;  %617 = vperm.xlu0 %1389, %v1997_v41   ;;  %592 = vperm.xlu1 %1390, %v2056_v37  }
 0x1ce   :  { %1020 = vst.msk [vmem:[#allocation2 + $0x30] sm:$0xff] %vm2606_vm13, %v2059_v39  ;;  %v496_v40 = vpop.xlane.xlu0 %495  ;;  %v498_v49 = vpop.xlane.xlu1 %497  ;;  %vm2170_vm10 = vmand %vm324_vm4, %vm2623_vm2 }
 0x1cf   :  { %v2075_v62 = vmax.f32 %v2061_v7, %v496_v40  ;;  %v2078_v48 = vmax.f32 %v2063_v38, %v498_v49  ;;  %v2100_v38 = vld [vmem:[#allocation2 + $0x78] sm:$0xff]  ;;  %v908_v7 = vld [vmem:[#allocation5 + $0x30] sm:$0xff] }
 0x1d0   :  { %2683 = vst [vmem:[#allocation31_spill] sm:$0xff] %v2100_v38 }
 0x1d1   :  { %2678 = vst [vmem:[#allocation28_spill] sm:$0xff] %v2075_v62  ;;  %1027 = vst.msk [vmem:[#allocation2 + $0x68] sm:$0xff] %vm2606_vm13, %v2075_v62  ;;  %587 = vperm.xlu0 %1389, %v2019_v59   ;;  %632 = vperm.xlu1 %1390, %v2075_v62   ;;  %v2779_v59 = vld [vmem:[#allocation10_spill] sm:$0xff] }
 0x1d2   :  { %1028 = vst.msk [vmem:[#allocation2 + $0x70] sm:$0xff] %vm2606_vm13, %v2078_v48  ;;  %v484_v40 = vpop.xlane.xlu0 %483  ;;  %v416_v49 = vpop.permute.xlu1 %415 }
 0x1d3   :  { %v2097_v24 = vmax.f32 %v2080_v28, %v484_v40  ;;  %vm436_vm3 = vcmp.eq.s32.totalorder %v416_v49, %v1674_v55  ;;  %v287_v40 = vadd.s32 64, %v1661_v51 }
 0x1d4   :  { %vm2104_vm6 = vmand %vm436_vm3, %vm2092_vm15 }
 0x1d5   :  { %2682 = vst [vmem:[#allocation30_spill] sm:$0xff] %v2097_v24  ;;  %1021 = vst.msk [vmem:[#allocation2 + $0x38] sm:$0xff] %vm2606_vm13, %v2097_v24  ;;  %627 = vperm.xlu0 %1389, %v2038_v47   ;;  %602 = vperm.xlu1 %1390, %v2097_v24   ;;  %vm325_vm14 = vcmp.ne.s32.totalorder %v287_v40, %v1664_v53  ;;  %v2691_v40 = vmov 0 }
 0x1d6   :  { %v500_v49 = vpop.xlane.xlu0 %499  ;;  %vm2133_vm3 = vmand %vm325_vm14, %vm2623_vm2 }
 0x1d7   :  { %v2118_v37 = vmax.f32 %v2100_v38, %v500_v49  ;;  %v289_v49 = vadd.s32 80, %v1661_v51  ;;  %v283_v38 = vadd.s32 32, %v1661_v51 }
 0x1d9   :  { %2686 = vst [vmem:[#allocation32_spill] sm:$0xff] %v2118_v37  ;;  %1029 = vst.msk [vmem:[#allocation2 + $0x78] sm:$0xff] %vm2606_vm13, %v2118_v37  ;;  %642 = vperm.xlu1 %1390, %v2118_v37   ;;  %v2687_v37 = vmov 0 }
 0x1da   :  { %v957_v62 = vpop.xlane.xlu0 %956  ;;  %v2688_v37 = vsel %vm2133_vm3, 4294967295, %v2687_v37 }
 0x1db   :  { %v985_v28 = vadd.f32 %v957_v62, %v905_v10  ;;  %v2689_v10 = vmov 0 }
 0x1dd   :  { %1001 = vst.msk [vmem:[#allocation5 + $0x18] sm:$0xff] %vm2606_vm13, %v985_v28  ;;  %v292_v28 = vadd.s32 104, %v1661_v51  ;;  %vm327_vm13 = vcmp.ne.s32.totalorder %v289_v49, %v1664_v53  ;;  %v2695_v49 = vmov 0 }
 0x1de   :  { %vm2150_vm14 = vmand %vm327_vm13, %vm2623_vm2  ;;  %vm428_vm13 = vcmp.eq.s32.totalorder %v1837_v8, %v1674_v55  ;;  %v2696_v49 = vsel %vm2170_vm10, 4294967295, %v2695_v49  ;;  %v2699_v8 = vmov 0 }
 0x1df   :  { %v2692_v40 = vsel %vm2150_vm14, 4294967295, %v2691_v40  ;;  %vm2195_vm4 = vmand %vm428_vm13, %vm2170_vm10 }
 0x1e0   :  { %v2702_v9 = vsel %vm2195_vm4, 4294967295, %v2701_v9  ;;  %v1238_v33 = vsel %vm2195_vm4, 1.0, %v2703_v52 }
 0x1e2   :  { %v383_v24 = vpop.permute.xlu0 %382 }
 0x1e6   :  { %v389_v47 = vpop.permute.xlu0 %388 }
 0x1ea   :  { %v395_v62 = vpop.permute.xlu0 %394 }
 0x1eb   :  { %vm429_vm15 = vcmp.eq.s32.totalorder %v395_v62, %v1674_v55 }
 0x1ec   :  { %vm2144_vm7 = vmand %vm429_vm15, %vm2133_vm3  ;;  %vm330_vm15 = vcmp.ne.s32.totalorder %v292_v28, %v1664_v53  ;;  %v290_v28 = vadd.s32 88, %v1661_v51 }
 0x1ed   :  { %v2690_v10 = vsel %vm2144_vm7, 4294967295, %v2689_v10  ;;  %vm2186_vm9 = vmand %vm330_vm15, %vm2623_vm2  ;;  %vm321_vm2 = vcmp.ne.s32.totalorder %v283_v38, %v1664_v53  ;;  %v1239_v5 = vsel %vm2144_vm7, 1.0, %v2703_v52 }
 0x1ee   :  { %v401_v62 = vpop.permute.xlu0 %400  ;;  %v2700_v8 = vsel %vm2186_vm9, 4294967295, %v2699_v8  ;;  %vm2206_vm15 = vmand %vm430_vm0, %vm2159_vm5  ;;  %vm328_vm13 = vcmp.ne.s32.totalorder %v290_v28, %v1664_v53  ;;  %vm425_vm0 = vcmp.eq.s32.totalorder %v383_v24, %v1674_v55  ;;  %v2784_v24 = vld [vmem:[#allocation11_spill] sm:$0xff] }
 0x1ef   :  { %vm431_vm3 = vcmp.eq.s32.totalorder %v401_v62, %v1674_v55  ;;  %v285_v62 = vadd.s32 48, %v1661_v51  ;;  %vm2711_vm5 = vmmov %vm2708_vm1 }
 0x1f0   :  { %vm2180_vm8 = vmand %vm431_vm3, %vm2150_vm14  ;;  %vm331_vm3 = vcmp.ne.s32.totalorder %v293_v50, %v1664_v53  ;;  %v2709_v50 = vmov 0 }
 0x1f1   :  { %vm2221_vm11 = vmand %vm331_vm3, %vm2708_vm1 }
 0x1f2   :  { %v410_v46 = vpop.permute.xlu0 %409  ;;  %v2710_v50 = vsel %vm2221_vm11, 4294967295, %v2709_v50  ;;  %vm2231_vm12 = vmand %vm321_vm2, %vm2711_vm5  ;;  %vm432_vm5 = vcmp.eq.s32.totalorder %v1842_v11, %v1674_v55  ;;  %v1240_v11 = vsel %vm2206_vm15, 1.0, %v2703_v52 }
 0x1f3   :  { %vm434_vm14 = vcmp.eq.s32.totalorder %v410_v46, %v1674_v55  ;;  %vm2241_vm3 = vmand %vm328_vm13, %vm2708_vm1  ;;  %vm427_vm13 = vcmp.eq.s32.totalorder %v389_v47, %v1674_v55  ;;  %v906_v46 = vld [vmem:[#allocation5 + $0x20] sm:$0xff] }
 0x1f4   :  { %960 = vadd.xlane.f32.xlu0 %v1236_v45  ;;  %vm2215_vm10 = vmand %vm434_vm14, %vm2186_vm9  ;;  %vm323_vm9 = vcmp.ne.s32.totalorder %v285_v62, %v1664_v53 }
 0x1f5   :  { %vm2256_vm4 = vmand %vm425_vm0, %vm2231_vm12 }
 0x1f6   :  { %v413_v45 = vpop.permute.xlu0 %412  ;;  %v1235_v38 = vsel %vm2256_vm4, 1.0, %v2703_v52  ;;  %vm2278_vm0 = vmand %vm432_vm5, %vm2241_vm3  ;;  %vm329_vm5 = vcmp.ne.s32.totalorder %v291_v34, %v1664_v53  ;;  %v1241_v34 = vsel %vm2180_vm8, 1.0, %v2703_v52 }
 0x1f7   :  { %vm435_vm14 = vcmp.eq.s32.totalorder %v413_v45, %v1674_v55 }
 0x1f8   :  { %964 = vadd.xlane.f32.xlu0 %v1238_v33  ;;  %vm2248_vm2 = vmand %vm435_vm14, %vm2221_vm11  ;;  %v2773_v33 = vsel %vm2180_vm8, %v1864_v19, 0.0 }
 0x1f9   :  { %vm2720_vm14 = vmmov %vm2708_vm1 }
 0x1fa   :  { %vm2266_vm1 = vmand %vm323_vm9, %vm2720_vm14 }
 0x1fb   :  { %vm2284_vm9 = vmand %vm427_vm13, %vm2266_vm1  ;;  %vm433_vm13 = vcmp.eq.s32.totalorder %v1872_v21, %v1674_v55  ;;  %v2729_v55 = vmov 0 }
 0x1fc   :  { %968 = vadd.xlane.f32.xlu0 %v1240_v11  ;;  %v1242_v11 = vsel %vm2278_vm0, 1.0, %v2703_v52  ;;  %v1237_v30 = vsel %vm2284_vm9, 1.0, %v2703_v52  ;;  %vm2306_vm11 = vmand %vm329_vm5, %vm2720_vm14  ;;  %vm2731_vm5 = vnez %v2650_v3  ;;  %vm2732_vm14 = vnez %v2658_v43 }
 0x1fd   :  { %958 = vadd.xlane.f32.xlu1 %v1235_v38  ;;  %v1244_v38 = vsel %vm2215_vm10, 1.0, %v2703_v52  ;;  %vm2318_vm7 = vmand %vm433_vm13, %vm2306_vm11  ;;  %v823_v53 = vsel %vm2731_vm5, %v1844_v12, 0.0  ;;  %vm2733_vm13 = vnez %v2654_v25  ;;  %vm2735_vm5 = vnez %v2646_v61 }
 0x1fe   :  { %v2730_v55 = vsel %vm2318_vm7, 4294967295, %v2729_v55  ;;  %v1243_v21 = vsel %vm2318_vm7, 1.0, %v2703_v52  ;;  %v2734_v3 = vsel %vm2733_vm13, %v1874_v22, 0.0  ;;  %vm2736_vm7 = vnez %v2644_v60 }
 0x1ff   :  { %v824_v43 = vsel %vm2736_vm7, %v1862_v18, 0.0  ;;  %v828_v25 = vsel %vm2284_vm9, %v1899_v35, 0.0  ;;  %vm2737_vm7 = vnez %v2648_v0  ;;  %vm2739_vm9 = vnez %v2688_v37 }
 0x200   :  { %972 = vadd.xlane.f32.xlu0 %v1242_v11  ;;  %v1245_v11 = vsel %vm2248_vm2, 1.0, %v2703_v52  ;;  %vm2741_vm13 = vnez %v2642_v58 }
 0x201   :  { %962 = vadd.xlane.f32.xlu1 %v1237_v30  ;;  %v1246_v30 = vsel %vm2104_vm6, 1.0, %v2703_v52  ;;  %v826_v52 = vsel %vm2256_vm4, %v1888_v27, 0.0  ;;  %vm2738_vm4 = vnez %v2702_v9 }
 0x204   :  { %976 = vadd.xlane.f32.xlu0 %v1244_v38  ;;  %v822_v38 = vsel %vm2735_vm5, %v1852_v15, 0.0  ;;  %vm2742_vm5 = vnez %v2656_v42 }
 0x205   :  { %966 = vadd.xlane.f32.xlu1 %v1239_v5  ;;  %v825_v5 = vsel %vm2732_vm14, %v1855_v16, 0.0  ;;  %vm2740_vm14 = vnez %v2694_v63 }
 0x208   :  { %980 = vadd.xlane.f32.xlu0 %v1246_v30 }
 0x209   :  { %970 = vadd.xlane.f32.xlu1 %v1241_v34 }
 0x20c   :  { %840 = vadd.xlane.f32.xlu0 %v823_v53 }
 0x20d   :  { %974 = vadd.xlane.f32.xlu1 %v1243_v21 }
 0x210   :  { %844 = vadd.xlane.f32.xlu0 %v825_v5 }
 0x211   :  { %978 = vadd.xlane.f32.xlu1 %v1245_v11 }
 0x214   :  { %848 = vadd.xlane.f32.xlu0 %v2734_v3 }
 0x215   :  { %838 = vadd.xlane.f32.xlu1 %v822_v38 }
 0x219   :  { %842 = vadd.xlane.f32.xlu1 %v824_v43 }
 0x21d   :  { %846 = vadd.xlane.f32.xlu1 %v826_v52 }
 0x221   :  { %850 = vadd.xlane.f32.xlu1 %v828_v25 }
 0x22a   :  { %597 = vperm.xlu0 %1389, %v2059_v39  }
 0x22e   :  { %637 = vperm.xlu0 %1389, %v2078_v48  }
 0x238   :  { %v573_v61 = vpop.permute.xlu1 %572 }
 0x239   :  { %v646_v30 = vsub.f32 %v1844_v12, %v573_v61 }
 0x23b   :  { %v663_v60 = vmul.f32 1.442695, %v646_v30 }
 0x23c   :  { %v608_v34 = vpop.permute.xlu0 %607  ;;  %v613_v53 = vpop.permute.xlu1 %612 }
 0x23d   :  { %1391 = vpow2.f32 %v663_v60  ;;  %v653_v45 = vsub.f32 %v1849_v14, %v608_v34  ;;  %v654_v21 = vsub.f32 %v1846_v13, %v613_v53 }
 0x23f   :  { %v677_v5 = vmul.f32 1.442695, %v653_v45  ;;  %v679_v11 = vmul.f32 1.442695, %v654_v21 }
 0x240   :  { %v568_v47 = vpop.permute.xlu1 %567 }
 0x241   :  { %1393 = vpow2.f32 %v677_v5  ;;  %v645_v3 = vsub.f32 %v1852_v15, %v568_v47 }
 0x242   :  { %1395 = vpow2.f32 %v679_v11 }
 0x243   :  { %v661_v38 = vmul.f32 1.442695, %v645_v3 }
 0x244   :  { %v583_v43 = vpop.permute.xlu1 %582 }
 0x245   :  { %v648_v52 = vsub.f32 %v1855_v16, %v583_v43  ;;  %1397 = vpow2.f32 %v661_v38  ;;  %v829_v16 = vsel %vm2738_vm4, %v1893_v31, 0.0  ;;  %vm2744_vm4 = vnez %v2640_v57 }
 0x247   :  { %v1392_v12 = vpop.eup %1391  ;;  %v667_v25 = vmul.f32 1.442695, %v648_v52 }
 0x248   :  { %v578_v61 = vpop.permute.xlu0 %577  ;;  %v623_v30 = vpop.permute.xlu1 %622  ;;  %v694_v60 = vsel %vm2737_vm7, %v1392_v12, 0.0  ;;  %vm2743_vm7 = vnez %v2692_v40 }
 0x249   :  { %v656_v34 = vsub.f32 %v1857_v17, %v623_v30  ;;  %743 = vadd.xlane.f32.xlu1 %v694_v60  ;;  %1399 = vpow2.f32 %v667_v25  ;;  %v647_v15 = vsub.f32 %v1862_v18, %v578_v61 }
 0x24b   :  { %v1394_v53 = vpop.eup %1393  ;;  %v683_v45 = vmul.f32 1.442695, %v656_v34  ;;  %v665_v3 = vmul.f32 1.442695, %v647_v15 }
 0x24c   :  { %v618_v21 = vpop.permute.xlu0 %617  ;;  %v593_v5 = vpop.permute.xlu1 %592  ;;  %v701_v11 = vsel %vm2739_vm9, %v1394_v53, 0.0  ;;  %vm2746_vm9 = vnez %v2700_v8  ;;  %v833_v8 = vsel %vm2278_vm0, %v1857_v17, 0.0  ;;  %v911_v17 = vld [vmem:[#allocation5 + $0x48] sm:$0xff] }
 0x24d   :  { %v1396_v47 = vpop.eup %1395  ;;  %v655_v0 = vsub.f32 %v1864_v19, %v618_v21  ;;  %852 = vadd.xlane.f32.xlu0 %v829_v16  ;;  %757 = vadd.xlane.f32.xlu1 %v701_v11  ;;  %1401 = vpow2.f32 %v683_v45  ;;  %v650_v18 = vsub.f32 %v1874_v22, %v593_v5  ;;  %v2777_v19 = vsel %vm2248_vm2, %v1901_v36, 0.0 }
 0x24e   :  { %v702_v12 = vsel %vm2740_vm14, %v1396_v47, 0.0  ;;  %vm2748_vm14 = vnez %v2681_v6  ;;  %v2750_v6 = vsel %vm2104_vm6, %v1895_v32, 0.0 }
 0x24f   :  { %v681_v38 = vmul.f32 1.442695, %v655_v0  ;;  %v1398_v9 = vpop.eup %1397  ;;  %v671_v25 = vmul.f32 1.442695, %v650_v18 }
 0x250   :  { %v588_v43 = vpop.permute.xlu0 %587  ;;  %v633_v52 = vpop.permute.xlu1 %632  ;;  %v693_v22 = vsel %vm2741_vm13, %v1398_v9, 0.0 }
 0x251   :  { %1403 = vpow2.f32 %v681_v38  ;;  %v649_v37 = vsub.f32 %v1888_v27, %v588_v43  ;;  %759 = vadd.xlane.f32.xlu0 %v702_v12  ;;  %v658_v30 = vsub.f32 %v1876_v23, %v633_v52 }
 0x252   :  { %1405 = vpow2.f32 %v665_v3 }
 0x253   :  { %v669_v61 = vmul.f32 1.442695, %v649_v37  ;;  %v1400_v53 = vpop.eup %1399  ;;  %v687_v15 = vmul.f32 1.442695, %v658_v30 }
 0x254   :  { %v628_v60 = vpop.permute.xlu0 %627  ;;  %v603_v34 = vpop.permute.xlu1 %602  ;;  %v696_v5 = vsel %vm2742_vm5, %v1400_v53, 0.0 }
 0x255   :  { %1407 = vpow2.f32 %v669_v61  ;;  %v657_v63 = vsub.f32 %v1884_v26, %v628_v60  ;;  %741 = vadd.xlane.f32.xlu0 %v693_v22  ;;  %v652_v27 = vsub.f32 %v1893_v31, %v603_v34  ;;  %v907_v61 = vld [vmem:[#allocation5 + $0x28] sm:$0xff] }
 0x256   :  { %1409 = vpow2.f32 %v671_v25 }
 0x257   :  { %v685_v45 = vmul.f32 1.442695, %v657_v63  ;;  %v1402_v16 = vpop.eup %1401  ;;  %v675_v58 = vmul.f32 1.442695, %v652_v27  ;;  %v913_v63 = vld [vmem:[#allocation5 + $0x58] sm:$0xff] }
 0x258   :  { %v643_v21 = vpop.permute.xlu1 %642  ;;  %v704_v3 = vsel %vm2241_vm3, %v1402_v16, 0.0  ;;  %vm2745_vm3 = vnez %v2652_v20  ;;  %v831_v20 = vsel %vm2206_vm15, %v1846_v13, 0.0  ;;  %v909_v13 = vld [vmem:[#allocation5 + $0x38] sm:$0xff] }
 0x259   :  { %1411 = vpow2.f32 %v685_v45  ;;  %747 = vadd.xlane.f32.xlu0 %v696_v5  ;;  %v660_v47 = vsub.f32 %v1895_v32, %v643_v21  ;;  %v915_v21 = vld [vmem:[#allocation5 + $0x68] sm:$0xff]  ;;  %v910_v5 = vld [vmem:[#allocation5 + $0x40] sm:$0xff] }
 0x25a   :  { %1413 = vpow2.f32 %v687_v15 }
 0x25b   :  { %v1404_v11 = vpop.eup %1403  ;;  %1415 = vpow2.f32 %v675_v58  ;;  %v691_v42 = vmul.f32 1.442695, %v660_v47 }
 0x25c   :  { %v703_v0 = vsel %vm2743_vm7, %v1404_v11, 0.0  ;;  %v1406_v38 = vpop.eup %1405 }
 0x25d   :  { %761 = vadd.xlane.f32.xlu1 %v703_v0  ;;  %763 = vadd.xlane.f32.xlu0 %v704_v3  ;;  %v695_v43 = vsel %vm2744_vm4, %v1406_v38, 0.0  ;;  %1417 = vpow2.f32 %v691_v42  ;;  %v917_v0 = vld [vmem:[#allocation5 + $0x78] sm:$0xff]  ;;  %v912_v3 = vld [vmem:[#allocation5 + $0x50] sm:$0xff] }
 0x25f   :  { %v1408_v31 = vpop.eup %1407 }
 0x260   :  { %v697_v18 = vsel %vm2231_vm12, %v1408_v31, 0.0  ;;  %v1410_v52 = vpop.eup %1409  ;;  %vm2747_vm12 = vnez %v2696_v49  ;;  %v2749_v49 = vsel %vm2215_vm10, %v1876_v23, 0.0 }
 0x261   :  { %749 = vadd.xlane.f32.xlu1 %v697_v18  ;;  %745 = vadd.xlane.f32.xlu0 %v695_v43  ;;  %v698_v12 = vsel %vm2745_vm3, %v1410_v52, 0.0  ;;  %v807_v43 = vld [vmem:[#allocation4 + $0x8] sm:$0xff]  ;;  %v914_v52 = vld [vmem:[#allocation5 + $0x60] sm:$0xff] }
 0x263   :  { %v1412_v40 = vpop.eup %1411 }
 0x264   :  { %v705_v44 = vsel %vm2306_vm11, %v1412_v40, 0.0  ;;  %v1414_v9 = vpop.eup %1413  ;;  %vm2751_vm11 = vcmask 7168  }
 0x265   :  { %765 = vadd.xlane.f32.xlu1 %v705_v44  ;;  %751 = vadd.xlane.f32.xlu0 %v698_v12  ;;  %v706_v28 = vsel %vm2746_vm9, %v1414_v9, 0.0  ;;  %v1416_v37 = vpop.eup %1415  ;;  %vm2752_vm15 = vmmov %vm2751_vm11 }
 0x266   :  { %v700_v57 = vsel %vm2747_vm12, %v1416_v37, 0.0  ;;  %vm2753_vm10 = vmmov %vm2751_vm11  ;;  %v916_v37 = vld [vmem:[#allocation5 + $0x70] sm:$0xff] }
 0x267   :  { %v1418_v25 = vpop.eup %1417  ;;  %vm2754_vm6 = vmmov %vm2753_vm10 }
 0x268   :  { %v708_v51 = vsel %vm2748_vm14, %v1418_v25, 0.0  ;;  %vm2755_vm0 = vmmov %vm2754_vm6 }
 0x269   :  { %767 = vadd.xlane.f32.xlu0 %v706_v28  ;;  %vm2756_vm13 = vmmov %vm2755_vm0  ;;  %v809_v28 = vld [vmem:[#allocation4 + $0x18] sm:$0xff] }
 0x26a   :  { %vm2757_vm5 = vmmov %vm2755_vm0 }
 0x26b   :  { %vm2758_vm7 = vmmov %vm2755_vm0 }
 0x26c   :  { %vm2759_vm4 = vmmov %vm2755_vm0 }
 0x26d   :  { %755 = vadd.xlane.f32.xlu0 %v700_v57  ;;  %vm2760_vm3 = vmmov %vm2755_vm0 }
 0x26e   :  { %vm2761_vm9 = vmmov %vm2755_vm0 }
 0x26f   :  { %vm2762_vm12 = vmmov %vm2755_vm0 }
 0x270   :  { %vm2763_vm14 = vmmov %vm2755_vm0 }
 0x271   :  { %771 = vadd.xlane.f32.xlu0 %v708_v51  ;;  %vm2790_vm8 = vmmov %vm2755_vm0 }
 0x272   :  { %vm2797_vm2 = vmmov %vm2755_vm0 }
 0x275   :  { %856 = vadd.xlane.f32.xlu0 %v831_v20 }
 0x279   :  { %860 = vadd.xlane.f32.xlu0 %v833_v8  ;;  %v811_v8 = vld [vmem:[#allocation4 + $0x28] sm:$0xff] }
 0x27d   :  { %864 = vadd.xlane.f32.xlu0 %v2749_v49  ;;  %v806_v49 = vld [vmem:[#allocation4] sm:$0xff] }
 0x281   :  { %v961_v30 = vpop.xlane.xlu0 %960  ;;  %868 = vadd.xlane.f32.xlu0 %v2750_v6 }
 0x282   :  { %v987_v41 = vadd.f32 %v961_v30, %v907_v61 }
 0x284   :  { %1003 = vst.msk [vmem:[#allocation5 + $0x28] sm:$0xff] %vm2751_vm11, %v987_v41  ;;  %vm2764_vm11 = vmmov %vm2755_vm0 }
 0x285   :  { %v965_v60 = vpop.xlane.xlu0 %964 }
 0x286   :  { %v989_v62 = vadd.f32 %v965_v60, %v909_v13  ;;  %v808_v13 = vld [vmem:[#allocation4 + $0x10] sm:$0xff] }
 0x288   :  { %1005 = vst.msk [vmem:[#allocation5 + $0x38] sm:$0xff] %vm2752_vm15, %v989_v62  ;;  %vm2765_vm15 = vmmov %vm2755_vm0 }
 0x289   :  { %v969_v34 = vpop.xlane.xlu0 %968 }
 0x28a   :  { %v991_v23 = vadd.f32 %v969_v34, %v911_v17  ;;  %v959_v22 = vpop.xlane.xlu1 %958  ;;  %v810_v17 = vld [vmem:[#allocation4 + $0x20] sm:$0xff] }
 0x28b   :  { %v986_v53 = vadd.f32 %v959_v22, %v906_v46 }
 0x28c   :  { %1007 = vst.msk [vmem:[#allocation5 + $0x48] sm:$0xff] %vm2753_vm10, %v991_v23  ;;  %vm2766_vm10 = vmmov %vm2755_vm0 }
 0x28d   :  { %1002 = vst.msk [vmem:[#allocation5 + $0x20] sm:$0xff] %vm2754_vm6, %v986_v53  ;;  %v973_v32 = vpop.xlane.xlu0 %972  ;;  %vm2767_vm6 = vmmov %vm2755_vm0 }
 0x28e   :  { %v993_v15 = vadd.f32 %v973_v32, %v913_v63  ;;  %v963_v45 = vpop.xlane.xlu1 %962  ;;  %v812_v63 = vld [vmem:[#allocation4 + $0x30] sm:$0xff] }
 0x28f   :  { %v988_v27 = vadd.f32 %v963_v45, %v908_v7 }
 0x290   :  { %1009 = vst.msk [vmem:[#allocation5 + $0x58] sm:$0xff] %vm2755_vm0, %v993_v15 }
 0x291   :  { %1004 = vst.msk [vmem:[#allocation5 + $0x30] sm:$0xff] %vm2756_vm13, %v988_v27  ;;  %v977_v16 = vpop.xlane.xlu0 %976  ;;  %vm2768_vm13 = vmmov %vm2755_vm0 }
 0x292   :  { %v995_v11 = vadd.f32 %v977_v16, %v915_v21  ;;  %v967_v58 = vpop.xlane.xlu1 %966 }
 0x293   :  { %v990_v47 = vadd.f32 %v967_v58, %v910_v5  ;;  %v2772_v58 = vsub.f32 %v1955_v56, %v1961_v2  ;;  %v2778_v2 = vld [vmem:[#allocation9_spill] sm:$0xff] }
 0x294   :  { %1011 = vst.msk [vmem:[#allocation5 + $0x68] sm:$0xff] %vm2757_vm5, %v995_v11  ;;  %vm2769_vm5 = vnez %v2710_v50  ;;  %v2774_v50 = vsub.f32 %v1963_v4, %v1977_v29  ;;  %v2780_v4 = vsub.f32 %v2778_v2, %v2779_v59 }
 0x295   :  { %1006 = vst.msk [vmem:[#allocation5 + $0x40] sm:$0xff] %vm2758_vm7, %v990_v47  ;;  %v981_v38 = vpop.xlane.xlu0 %980  ;;  %vm2770_vm7 = vnez %v2690_v10  ;;  %v535_v47 = vmul.f32 1.442695, %v2772_v58 }
 0x296   :  { %v997_v31 = vadd.f32 %v981_v38, %v917_v0  ;;  %v971_v42 = vpop.xlane.xlu1 %970  ;;  %v2771_v11 = vsel %vm2770_vm7, %v1849_v14, 0.0  ;;  %v549_v0 = vmul.f32 1.442695, %v2774_v50  ;;  %v2776_v14 = vsub.f32 %v1953_v54, %v1958_v1  ;;  %v710_v38 = vld [vmem:[#allocation3 + $0x8] sm:$0xff]  ;;  %vm2824_vm7 = vmmov %vm2755_vm0 }
 0x297   :  { %v992_v18 = vadd.f32 %v971_v42, %v912_v3  ;;  %v533_v29 = vmul.f32 1.442695, %v2780_v4 }
 0x298   :  { %1013 = vst.msk [vmem:[#allocation5 + $0x78] sm:$0xff] %vm2759_vm4, %v997_v31  ;;  %v551_v56 = vmul.f32 1.442695, %v2776_v14  ;;  %vm2798_vm4 = vmmov %vm2755_vm0  ;;  %v2806_v14 = vld [vmem:[#allocation26_spill] sm:$0xff] }
 0x299   :  { %1008 = vst.msk [vmem:[#allocation5 + $0x50] sm:$0xff] %vm2760_vm3, %v992_v18  ;;  %v841_v40 = vpop.xlane.xlu0 %840  ;;  %vm2805_vm3 = vmmov %vm2755_vm0 }
 0x29a   :  { %v871_v44 = vadd.f32 %v841_v40, %v807_v43  ;;  %v975_v12 = vpop.xlane.xlu1 %974  ;;  %v717_v43 = vld [vmem:[#allocation3 + $0x40] sm:$0xff] }
 0x29b   :  { %v994_v9 = vadd.f32 %v975_v12, %v914_v52  ;;  %v2785_v52 = vld [vmem:[#allocation13_spill] sm:$0xff]  ;;  %v2787_v12 = vld [vmem:[#allocation15_spill] sm:$0xff] }
 0x29c   :  { %887 = vst.msk [vmem:[#allocation4 + $0x8] sm:$0xff] %vm2761_vm9, %v871_v44  ;;  %vm2809_vm9 = vmmov %vm2755_vm0 }
 0x29d   :  { %1010 = vst.msk [vmem:[#allocation5 + $0x60] sm:$0xff] %vm2762_vm12, %v994_v9  ;;  %v845_v57 = vpop.xlane.xlu0 %844  ;;  %v2788_v9 = vld [vmem:[#allocation17_spill] sm:$0xff]  ;;  %vm2813_vm12 = vmmov %vm2755_vm0 }
 0x29e   :  { %v873_v25 = vadd.f32 %v845_v57, %v809_v28  ;;  %v979_v51 = vpop.xlane.xlu1 %978  ;;  %v2789_v28 = vsub.f32 %v2787_v12, %v2788_v9  ;;  %v813_v57 = vld [vmem:[#allocation4 + $0x38] sm:$0xff]  ;;  %v713_v12 = vld [vmem:[#allocation3 + $0x20] sm:$0xff] }
 0x29f   :  { %v996_v20 = vadd.f32 %v979_v51, %v916_v37 }
 0x2a0   :  { %889 = vst.msk [vmem:[#allocation4 + $0x18] sm:$0xff] %vm2763_vm14, %v873_v25  ;;  %v555_v37 = vmul.f32 1.442695, %v2789_v28  ;;  %vm2817_vm14 = vmmov %vm2755_vm0 }
 0x2a1   :  { %1012 = vst.msk [vmem:[#allocation5 + $0x70] sm:$0xff] %vm2764_vm11, %v996_v20  ;;  %v849_v61 = vpop.xlane.xlu0 %848  ;;  %vm2818_vm11 = vmmov %vm2755_vm0 }
 0x2a2   :  { %v875_v30 = vadd.f32 %v849_v61, %v811_v8  ;;  %v839_v6 = vpop.xlane.xlu1 %838  ;;  %v2791_v61 = vld [vmem:[#allocation16_spill] sm:$0xff] }
 0x2a3   :  { %v870_v41 = vadd.f32 %v839_v6, %v806_v49  ;;  %v718_v49 = vld [vmem:[#allocation3 + $0x48] sm:$0xff] }
 0x2a4   :  { %891 = vst.msk [vmem:[#allocation4 + $0x28] sm:$0xff] %vm2765_vm15, %v875_v30  ;;  %v2792_v30 = vld [vmem:[#allocation18_spill] sm:$0xff]  ;;  %vm2819_vm15 = vmmov %vm2755_vm0 }
 0x2a5   :  { %886 = vst.msk [vmem:[#allocation4] sm:$0xff] %vm2766_vm10, %v870_v41  ;;  %v2793_v6 = vsub.f32 %v2791_v61, %v2792_v30  ;;  %v1066_v28 = vld [vmem:[#allocation4 + $0x8] sm:$0xff]  ;;  %vm2820_vm10 = vmmov %vm2755_vm0 }
 0x2a6   :  { %v843_v60 = vpop.xlane.xlu1 %842 }
 0x2a7   :  { %v872_v62 = vadd.f32 %v843_v60, %v808_v13  ;;  %v541_v41 = vmul.f32 1.442695, %v2793_v6 }
 0x2a9   :  { %888 = vst.msk [vmem:[#allocation4 + $0x10] sm:$0xff] %vm2767_vm6, %v872_v62  ;;  %v598_v46 = vpop.permute.xlu0 %597  ;;  %v2794_v62 = vld [vmem:[#allocation19_spill] sm:$0xff]  ;;  %vm2821_vm6 = vmmov %vm2755_vm0 }
 0x2aa   :  { %v651_v34 = vsub.f32 %v1899_v35, %v598_v46  ;;  %v847_v23 = vpop.xlane.xlu1 %846 }
 0x2ab   :  { %v874_v22 = vadd.f32 %v847_v23, %v810_v17  ;;  %v2795_v17 = vld [vmem:[#allocation21_spill] sm:$0xff] }
 0x2ac   :  { %v673_v53 = vmul.f32 1.442695, %v651_v34  ;;  %v2796_v46 = vsub.f32 %v2794_v62, %v2795_v17 }
 0x2ad   :  { %890 = vst.msk [vmem:[#allocation4 + $0x20] sm:$0xff] %vm2755_vm0, %v874_v22  ;;  %v638_v7 = vpop.permute.xlu0 %637 }
 0x2ae   :  { %1419 = vpow2.f32 %v673_v53  ;;  %v659_v32 = vsub.f32 %v1901_v36, %v638_v7  ;;  %v851_v15 = vpop.xlane.xlu1 %850  ;;  %v2786_v36 = vsub.f32 %v2784_v24, %v2785_v52  ;;  %v537_v34 = vmul.f32 1.442695, %v2796_v46  ;;  %v1034_v7 = vld [vmem:[#allocation5 + $0x8] sm:$0xff] }
 0x2af   :  { %v876_v45 = vadd.f32 %v851_v15, %v812_v63  ;;  %v709_v63 = vld [vmem:[#allocation3] sm:$0xff]  ;;  %v2800_v15 = vld [vmem:[#allocation22_spill] sm:$0xff] }
 0x2b0   :  { %v689_v27 = vmul.f32 1.442695, %v659_v32  ;;  %v553_v40 = vmul.f32 1.442695, %v2786_v36  ;;  %v2799_v32 = vld [vmem:[#allocation20_spill] sm:$0xff] }
 0x2b1   :  { %892 = vst.msk [vmem:[#allocation4 + $0x30] sm:$0xff] %vm2768_vm13, %v876_v45  ;;  %v2801_v45 = vsub.f32 %v2799_v32, %v2800_v15  ;;  %v1036_v15 = vld [vmem:[#allocation5 + $0x18] sm:$0xff]  ;;  %vm2822_vm13 = vmmov %vm2755_vm0 }
 0x2b2   :  { %1421 = vpow2.f32 %v689_v27 }
 0x2b3   :  { %1423 = vpow2.f32 %v535_v47  ;;  %v557_v27 = vmul.f32 1.442695, %v2801_v45 }
 0x2b4   :  { %1425 = vpow2.f32 %v549_v0  ;;  %v712_v0 = vld [vmem:[#allocation3 + $0x18] sm:$0xff] }
 0x2b5   :  { %1427 = vpow2.f32 %v551_v56  ;;  %v2807_v56 = vld [vmem:[#allocation28_spill] sm:$0xff] }
 0x2b6   :  { %1429 = vpow2.f32 %v533_v29 }
 0x2b8   :  { %v1420_v21 = vpop.eup %1419 }
 0x2b9   :  { %v699_v35 = vsel %vm2266_vm1, %v1420_v21, 0.0  ;;  %vm2775_vm1 = vnez %v2730_v55  ;;  %v2782_v55 = vld [vmem:[#allocation14_spill] sm:$0xff] }
 0x2ba   :  { %753 = vadd.xlane.f32.xlu1 %v699_v35  ;;  %v834_v10 = vsel %vm2775_vm1, %v1884_v26, 0.0  ;;  %v2781_v26 = vld [vmem:[#allocation12_spill] sm:$0xff]  ;;  %v2802_v35 = vld [vmem:[#allocation23_spill] sm:$0xff]  ;;  %vm2825_vm1 = vmmov %vm2755_vm0 }
 0x2bb   :  { %v2783_v31 = vsub.f32 %v2781_v26, %v2782_v55  ;;  %v719_v26 = vld [vmem:[#allocation3 + $0x50] sm:$0xff] }
 0x2bc   :  { %v1422_v5 = vpop.eup %1421 }
 0x2bd   :  { %v707_v16 = vsel %vm2769_vm5, %v1422_v5, 0.0  ;;  %v1424_v3 = vpop.eup %1423  ;;  %v539_v42 = vmul.f32 1.442695, %v2783_v31  ;;  %v2803_v5 = vld [vmem:[#allocation25_spill] sm:$0xff]  ;;  %vm2823_vm5 = vmmov %vm2755_vm0 }
 0x2be   :  { %769 = vadd.xlane.f32.xlu1 %v707_v16  ;;  %v726_v54 = vmul.f32 %v1424_v3, %v710_v38  ;;  %v1426_v1 = vpop.eup %1425  ;;  %v2804_v16 = vsub.f32 %v2802_v35, %v2803_v5  ;;  %v720_v38 = vld [vmem:[#allocation3 + $0x58] sm:$0xff]  ;;  %v2810_v31 = vld [vmem:[#allocation29_spill] sm:$0xff] }
 0x2bf   :  { %1431 = vpow2.f32 %v539_v42  ;;  %v733_v25 = vmul.f32 %v1426_v1, %v717_v43  ;;  %v1428_v51 = vpop.eup %1427  ;;  %v2811_v42 = vld [vmem:[#allocation30_spill] sm:$0xff] }
 0x2c0   :  { %1433 = vpow2.f32 %v553_v40  ;;  %v734_v23 = vmul.f32 %v1428_v51, %v718_v49  ;;  %v1430_v22 = vpop.eup %1429  ;;  %v1033_v51 = vld [vmem:[#allocation5] sm:$0xff] }
 0x2c1   :  { %1435 = vpow2.f32 %v555_v37  ;;  %v725_v47 = vmul.f32 %v1430_v22, %v709_v63  ;;  %v721_v63 = vld [vmem:[#allocation3 + $0x60] sm:$0xff] }
 0x2c2   :  { %854 = vadd.xlane.f32.xlu1 %v2771_v11  ;;  %1437 = vpow2.f32 %v541_v41  ;;  %v543_v11 = vmul.f32 1.442695, %v2804_v16 }
 0x2c3   :  { %1439 = vpow2.f32 %v537_v34 }
 0x2c6   :  { %858 = vadd.xlane.f32.xlu1 %v2773_v33 }
 0x2c9   :  { %v1432_v33 = vpop.eup %1431 }
 0x2ca   :  { %862 = vadd.xlane.f32.xlu1 %v834_v10  ;;  %v1434_v59 = vpop.eup %1433  ;;  %v728_v4 = vmul.f32 %v1432_v33, %v712_v0  ;;  %v1035_v0 = vld [vmem:[#allocation5 + $0x10] sm:$0xff] }
 0x2cb   :  { %v1436_v29 = vpop.eup %1435  ;;  %v735_v24 = vmul.f32 %v1434_v59, %v719_v26  ;;  %v1065_v59 = vld [vmem:[#allocation4] sm:$0xff] }
 0x2cc   :  { %v736_v43 = vmul.f32 %v1436_v29, %v720_v38  ;;  %v1037_v29 = vld [vmem:[#allocation5 + $0x20] sm:$0xff] }
 0x2ce   :  { %866 = vadd.xlane.f32.xlu1 %v2777_v19  ;;  %v2808_v19 = vsub.f32 %v2806_v14, %v2807_v56 }
 0x2d0   :  { %v559_v2 = vmul.f32 1.442695, %v2808_v19  ;;  %v716_v19 = vld [vmem:[#allocation3 + $0x38] sm:$0xff] }
 0x2d6   :  { %v744_v18 = vpop.xlane.xlu1 %743 }
 0x2d7   :  { %v774_v44 = vadd.f32 %v744_v18, %v726_v54  ;;  %v2812_v54 = vsub.f32 %v2810_v31, %v2811_v42  ;;  %v1438_v18 = vpop.eup %1437  ;;  %v1097_v31 = vld [vmem:[#allocation2] sm:$0xff] }
 0x2d8   :  { %v1440_v52 = vpop.eup %1439  ;;  %v729_v62 = vmul.f32 %v1438_v18, %v713_v12  ;;  %v1038_v12 = vld [vmem:[#allocation5 + $0x28] sm:$0xff] }
 0x2d9   :  { %791 = vst.msk [vmem:[#allocation3 + $0x8] sm:$0xff] %vm2790_vm8, %v774_v44  ;;  %v547_v1 = vmul.f32 1.442695, %v2812_v54  ;;  %v711_v44 = vld [vmem:[#allocation3 + $0x10] sm:$0xff]  ;;  %vm2826_vm8 = vmmov %vm2755_vm0 }
 0x2da   :  { %v853_v20 = vpop.xlane.xlu0 %852  ;;  %v758_v8 = vpop.xlane.xlu1 %757 }
 0x2db   :  { %v877_v13 = vadd.f32 %v853_v20, %v813_v57  ;;  %v781_v60 = vadd.f32 %v758_v8, %v733_v25  ;;  %v2814_v20 = vld [vmem:[#allocation31_spill] sm:$0xff]  ;;  %v2815_v8 = vld [vmem:[#allocation32_spill] sm:$0xff] }
 0x2dc   :  { %v2816_v49 = vsub.f32 %v2814_v20, %v2815_v8 }
 0x2dd   :  { %893 = vst.msk [vmem:[#allocation4 + $0x38] sm:$0xff] %vm2797_vm2, %v877_v13  ;;  %v1098_v13 = vld [vmem:[#allocation2 + $0x8] sm:$0xff]  ;;  %vm2827_vm2 = vmmov %vm2755_vm0 }
 0x2de   :  { %798 = vst.msk [vmem:[#allocation3 + $0x40] sm:$0xff] %vm2798_vm4, %v781_v60  ;;  %v760_v53 = vpop.xlane.xlu0 %759  ;;  %v563_v61 = vmul.f32 1.442695, %v2816_v49  ;;  %v727_v60 = vmul.f32 %v1440_v52, %v711_v44  ;;  %v724_v52 = vld [vmem:[#allocation3 + $0x78] sm:$0xff]  ;;  %vm2828_vm4 = vmmov %vm2755_vm0 }
 0x2df   :  { %v782_v21 = vadd.f32 %v760_v53, %v734_v23  ;;  %v714_v53 = vld [vmem:[#allocation3 + $0x28] sm:$0xff] }
 0x2e0   :  { %v1114_v58 = vld [vmem:[#allocation3 + $0x8] sm:$0xff] }
 0x2e1   :  { %1441 = vlog2.f32 %v1114_v58  ;;  %799 = vst.msk [vmem:[#allocation3 + $0x48] sm:$0xff] %vm2805_vm3, %v782_v21  ;;  %vm2829_vm3 = vmmov %vm2755_vm0 }
 0x2e2   :  { %1443 = vrcp.f32 %v1034_v7  ;;  %v742_v50 = vpop.xlane.xlu0 %741 }
 0x2e3   :  { %1445 = vpow2.f32 %v557_v27  ;;  %v773_v10 = vadd.f32 %v742_v50, %v725_v47  ;;  %v722_v47 = vld [vmem:[#allocation3 + $0x68] sm:$0xff] }
 0x2e4   :  { %1447 = vpow2.f32 %v543_v11 }
 0x2e5   :  { %790 = vst.msk [vmem:[#allocation3] sm:$0xff] %vm2809_vm9, %v773_v10  ;;  %1449 = vpow2.f32 %v559_v2  ;;  %vm2830_vm9 = vmmov %vm2755_vm0 }
 0x2e6   :  { %v748_v3 = vpop.xlane.xlu0 %747  ;;  %1451 = vpow2.f32 %v547_v1 }
 0x2e7   :  { %v776_v55 = vadd.f32 %v748_v3, %v728_v4 }
 0x2e8   :  { %v1122_v42 = vld [vmem:[#allocation3 + $0x48] sm:$0xff] }
 0x2e9   :  { %793 = vst.msk [vmem:[#allocation3 + $0x18] sm:$0xff] %vm2813_vm12, %v776_v55  ;;  %vm2831_vm12 = vmmov %vm2755_vm0 }
 0x2ea   :  { %v764_v36 = vpop.xlane.xlu0 %763  ;;  %v762_v40 = vpop.xlane.xlu1 %761 }
 0x2eb   :  { %v1442_v9 = vpop.eup %1441  ;;  %v784_v37 = vadd.f32 %v764_v36, %v736_v43  ;;  %v783_v57 = vadd.f32 %v762_v40, %v735_v24  ;;  %v1068_v40 = vld [vmem:[#allocation4 + $0x18] sm:$0xff] }
 0x2ec   :  { %v1444_v25 = vpop.eup %1443  ;;  %v1132_v30 = vmul.f32 0.6931472, %v1442_v9  ;;  %v1113_v6 = vld [vmem:[#allocation3] sm:$0xff] }
 0x2ed   :  { %v1446_v41 = vpop.eup %1445  ;;  %1453 = vlog2.f32 %v1113_v6  ;;  %801 = vst.msk [vmem:[#allocation3 + $0x58] sm:$0xff] %vm2817_vm14, %v784_v37  ;;  %v1082_v46 = vmul.f32 %v1444_v25, %v1066_v28  ;;  %v1100_v25 = vld [vmem:[#allocation2 + $0x18] sm:$0xff]  ;;  %v1042_v6 = vld [vmem:[#allocation5 + $0x48] sm:$0xff]  ;;  %vm2832_vm14 = vmmov %vm2755_vm0 }
 0x2ee   :  { %800 = vst.msk [vmem:[#allocation3 + $0x50] sm:$0xff] %vm2818_vm11, %v783_v57  ;;  %v1448_v17 = vpop.eup %1447  ;;  %v1162_v34 = vadd.f32 %v1132_v30, %v1098_v13  ;;  %v746_v23 = vpop.xlane.xlu0 %745  ;;  %1455 = vrcp.f32 %v1033_v51  ;;  %v737_v35 = vmul.f32 %v1446_v41, %v721_v63  ;;  %vm2833_vm11 = vmmov %vm2755_vm0 }
 0x2ef   :  { %v750_v22 = vpop.xlane.xlu1 %749  ;;  %v775_v7 = vadd.f32 %v746_v23, %v727_v60  ;;  %1457 = vpow2.f32 %v563_v61  ;;  %v730_v21 = vmul.f32 %v1448_v17, %v714_v53  ;;  %v1450_v5 = vpop.eup %1449  ;;  %v815_v60 = vld [vmem:[#allocation4 + $0x48] sm:$0xff]  ;;  %v1067_v53 = vld [vmem:[#allocation4 + $0x10] sm:$0xff] }
 0x2f0   :  { %v777_v32 = vadd.f32 %v750_v22, %v729_v62  ;;  %v1178_v45 = vsub.f32 %v1082_v46, %v1162_v34  ;;  %v1116_v27 = vld [vmem:[#allocation3 + $0x18] sm:$0xff]  ;;  %v738_v10 = vmul.f32 %v1450_v5, %v722_v47  ;;  %v1452_v14 = vpop.eup %1451  ;;  %v1099_v5 = vld [vmem:[#allocation2 + $0x10] sm:$0xff] }
 0x2f1   :  { %1459 = vlog2.f32 %v1116_v27  ;;  %792 = vst.msk [vmem:[#allocation3 + $0x10] sm:$0xff] %vm2819_vm15, %v775_v7  ;;  %v732_v54 = vmul.f32 %v1452_v14, %v716_v19  ;;  %v1044_v22 = vld [vmem:[#allocation5 + $0x58] sm:$0xff]  ;;  %v1070_v14 = vld [vmem:[#allocation4 + $0x28] sm:$0xff]  ;;  %vm2834_vm15 = vmmov %vm2755_vm0 }
 0x2f2   :  { %794 = vst.msk [vmem:[#allocation3 + $0x20] sm:$0xff] %vm2820_vm10, %v777_v32  ;;  %v1194_v16 = vmul.f32 -1.0, %v1178_v45  ;;  %v752_v11 = vpop.xlane.xlu0 %751  ;;  %1461 = vrcp.f32 %v1036_v15  ;;  %v817_v7 = vld [vmem:[#allocation4 + $0x58] sm:$0xff]  ;;  %v1069_v45 = vld [vmem:[#allocation4 + $0x20] sm:$0xff]  ;;  %vm2835_vm10 = vmmov %vm2755_vm0 }
 0x2f3   :  { %v766_v58 = vpop.xlane.xlu1 %765  ;;  %v778_v33 = vadd.f32 %v752_v11, %v730_v21  ;;  %1463 = vrcp.f32 %v1035_v0  ;;  %v1040_v15 = vld [vmem:[#allocation5 + $0x38] sm:$0xff] }
 0x2f4   :  { %v785_v50 = vadd.f32 %v766_v58, %v737_v35  ;;  %1210 = vst.msk [vmem:[%s2590_s4 + $0x8] sm:$0xff] %vm2821_vm6, %v1194_v16  ;;  %v1124_v51 = vld [vmem:[#allocation3 + $0x58] sm:$0xff]  ;;  %v1101_v58 = vld [vmem:[#allocation2 + $0x20] sm:$0xff]  ;;  %vm2836_vm6 = vmmov %vm2755_vm0 }
 0x2f5   :  { %795 = vst.msk [vmem:[#allocation3 + $0x28] sm:$0xff] %vm2755_vm0, %v778_v33 }
 0x2f6   :  { %802 = vst.msk [vmem:[#allocation3 + $0x60] sm:$0xff] %vm2822_vm13, %v785_v50  ;;  %v768_v56 = vpop.xlane.xlu0 %767  ;;  %vm2837_vm13 = vmmov %vm2755_vm0 }
 0x2f7   :  { %v1454_v2 = vpop.eup %1453  ;;  %v786_v4 = vadd.f32 %v768_v56, %v738_v10  ;;  %v1046_v10 = vld [vmem:[#allocation5 + $0x68] sm:$0xff] }
 0x2f8   :  { %v1130_v3 = vmul.f32 0.6931472, %v1454_v2  ;;  %v1115_v38 = vld [vmem:[#allocation3 + $0x10] sm:$0xff]  ;;  %v1456_v55 = vpop.eup %1455 }
 0x2f9   :  { %v1117_v26 = vld [vmem:[#allocation3 + $0x20] sm:$0xff]  ;;  %1465 = vlog2.f32 %v1115_v38  ;;  %803 = vst.msk [vmem:[#allocation3 + $0x68] sm:$0xff] %vm2823_vm5, %v786_v4  ;;  %v1458_v1 = vpop.eup %1457  ;;  %v1081_v18 = vmul.f32 %v1456_v55, %v1065_v59  ;;  %vm2838_vm5 = vmmov %vm2755_vm0 }
 0x2fa   :  { %v1161_v43 = vadd.f32 %v1130_v3, %v1097_v31  ;;  %1467 = vlog2.f32 %v1117_v26  ;;  %v756_v24 = vpop.xlane.xlu0 %755  ;;  %v740_v20 = vmul.f32 %v1458_v1, %v724_v52  ;;  %v819_v3 = vld [vmem:[#allocation4 + $0x68] sm:$0xff] }
 0x2fb   :  { %v1460_v36 = vpop.eup %1459  ;;  %1469 = vrcp.f32 %v1037_v29  ;;  %v780_v44 = vadd.f32 %v756_v24, %v732_v54  ;;  %v1102_v26 = vld [vmem:[#allocation2 + $0x28] sm:$0xff]  ;;  %v1048_v24 = vld [vmem:[#allocation5 + $0x78] sm:$0xff] }
 0x2fc   :  { %1471 = vlog2.f32 %v1122_v42  ;;  %v1177_v9 = vsub.f32 %v1081_v18, %v1161_v43  ;;  %v1136_v28 = vmul.f32 0.6931472, %v1460_v36  ;;  %v1118_v37 = vld [vmem:[#allocation3 + $0x28] sm:$0xff]  ;;  %v1462_v57 = vpop.eup %1461 }
 0x2fd   :  { %1473 = vlog2.f32 %v1118_v37  ;;  %797 = vst.msk [vmem:[#allocation3 + $0x38] sm:$0xff] %vm2824_vm7, %v780_v44  ;;  %v1084_v8 = vmul.f32 %v1462_v57, %v1068_v40  ;;  %v1464_v17 = vpop.eup %1463  ;;  %v1106_v44 = vld [vmem:[#allocation2 + $0x48] sm:$0xff]  ;;  %vm2841_vm7 = vmmov %vm2755_vm0 }
 0x2fe   :  { %v1193_v49 = vmul.f32 -1.0, %v1177_v9  ;;  %v1164_v61 = vadd.f32 %v1136_v28, %v1100_v25  ;;  %v772_v30 = vpop.xlane.xlu0 %771  ;;  %1475 = vrcp.f32 %v1038_v12  ;;  %v1083_v47 = vmul.f32 %v1464_v17, %v1067_v53  ;;  %v821_v28 = vld [vmem:[#allocation4 + $0x78] sm:$0xff] }
 0x2ff   :  { %v788_v41 = vadd.f32 %v772_v30, %v740_v20  ;;  %1477 = vlog2.f32 %v1124_v51 }
 0x300   :  { %1209 = vst.msk [vmem:[%s2590_s4] sm:$0xff] %vm2825_vm1, %v1193_v49  ;;  %v1180_v13 = vsub.f32 %v1084_v8, %v1164_v61  ;;  %v1126_v62 = vld [vmem:[#allocation3 + $0x68] sm:$0xff]  ;;  %1479 = vrcp.f32 %v1042_v6  ;;  %v1072_v61 = vld [vmem:[#allocation4 + $0x38] sm:$0xff]  ;;  %vm2842_vm1 = vmmov %vm2755_vm0 }
 0x301   :  { %805 = vst.msk [vmem:[#allocation3 + $0x78] sm:$0xff] %vm2826_vm8, %v788_v41  ;;  %1481 = vlog2.f32 %v1126_v62  ;;  %vm2843_vm8 = vmmov %vm2755_vm0 }
 0x302   :  { %v1196_v46 = vmul.f32 -1.0, %v1180_v13  ;;  %v857_v34 = vpop.xlane.xlu0 %856  ;;  %v1108_v13 = vld [vmem:[#allocation2 + $0x58] sm:$0xff] }
 0x303   :  { %v1466_v23 = vpop.eup %1465  ;;  %v879_v63 = vadd.f32 %v857_v34, %v815_v60 }
 0x304   :  { %v1468_v32 = vpop.eup %1467  ;;  %1212 = vst.msk [vmem:[%s2590_s4 + $0x18] sm:$0xff] %vm2827_vm2, %v1196_v46  ;;  %v1134_v27 = vmul.f32 0.6931472, %v1466_v23  ;;  %v1120_v21 = vld [vmem:[#allocation3 + $0x38] sm:$0xff]  ;;  %vm2844_vm2 = vmmov %vm2755_vm0 }
 0x305   :  { %v1470_v35 = vpop.eup %1469  ;;  %v1138_v16 = vmul.f32 0.6931472, %v1468_v32  ;;  %1483 = vlog2.f32 %v1120_v21  ;;  %895 = vst.msk [vmem:[#allocation4 + $0x48] sm:$0xff] %vm2828_vm4, %v879_v63  ;;  %v1104_v46 = vld [vmem:[#allocation2 + $0x38] sm:$0xff]  ;;  %vm2845_vm4 = vmmov %vm2755_vm0 }
 0x306   :  { %v1472_v11 = vpop.eup %1471  ;;  %1485 = vrcp.f32 %v1044_v22  ;;  %v1163_v33 = vadd.f32 %v1134_v27, %v1099_v5  ;;  %v861_v50 = vpop.xlane.xlu0 %860  ;;  %v1085_v56 = vmul.f32 %v1470_v35, %v1069_v45  ;;  %v1110_v27 = vld [vmem:[#allocation2 + $0x68] sm:$0xff] }
 0x307   :  { %v1474_v0 = vpop.eup %1473  ;;  %1487 = vrcp.f32 %v1040_v15  ;;  %v1165_v19 = vadd.f32 %v1138_v16, %v1101_v58  ;;  %v881_v2 = vadd.f32 %v861_v50, %v817_v7  ;;  %v1148_v55 = vmul.f32 0.6931472, %v1472_v11 }
 0x308   :  { %v1179_v59 = vsub.f32 %v1083_v47, %v1163_v33  ;;  %v1140_v4 = vmul.f32 0.6931472, %v1474_v0  ;;  %v1128_v29 = vld [vmem:[#allocation3 + $0x78] sm:$0xff]  ;;  %v1476_v38 = vpop.eup %1475 }
 0x309   :  { %v1181_v31 = vsub.f32 %v1085_v56, %v1165_v19  ;;  %1489 = vlog2.f32 %v1128_v29  ;;  %897 = vst.msk [vmem:[#allocation4 + $0x58] sm:$0xff] %vm2829_vm3, %v881_v2  ;;  %v1478_v42 = vpop.eup %1477  ;;  %v1086_v54 = vmul.f32 %v1476_v38, %v1070_v14  ;;  %v1170_v57 = vadd.f32 %v1148_v55, %v1106_v44  ;;  %v1112_v0 = vld [vmem:[#allocation2 + $0x78] sm:$0xff]  ;;  %v2840_v38 = vld [vmem:[#allocation27_spill] sm:$0xff]  ;;  %v1041_v44 = vld [vmem:[#allocation5 + $0x40] sm:$0xff] }
 0x30a   :  { %1491 = vrcp.f32 %v1046_v10  ;;  %v1195_v1 = vmul.f32 -1.0, %v1179_v59  ;;  %v1166_v18 = vadd.f32 %v1140_v4, %v1102_v26  ;;  %v865_v43 = vpop.xlane.xlu0 %864  ;;  %v1480_v40 = vpop.eup %1479  ;;  %v1152_v37 = vmul.f32 0.6931472, %v1478_v42  ;;  %v2839_v4 = vld [vmem:[#allocation24_spill] sm:$0xff]  ;;  %v715_v42 = vld [vmem:[#allocation3 + $0x30] sm:$0xff]  ;;  %vm2846_vm3 = vmmov %vm2755_vm0 }
 0x30b   :  { %v1197_v52 = vmul.f32 -1.0, %v1181_v31  ;;  %v883_v36 = vadd.f32 %v865_v43, %v819_v3  ;;  %v1482_v51 = vpop.eup %1481  ;;  %1493 = vrcp.f32 %v1048_v24  ;;  %v523_v29 = vsub.f32 %v2839_v4, %v2059_v39  ;;  %v723_v24 = vld [vmem:[#allocation3 + $0x70] sm:$0xff] }
 0x30c   :  { %1211 = vst.msk [vmem:[%s2590_s4 + $0x10] sm:$0xff] %vm2830_vm9, %v1195_v1  ;;  %v1182_v12 = vsub.f32 %v1086_v54, %v1166_v18  ;;  %v1074_v9 = vld [vmem:[#allocation4 + $0x48] sm:$0xff]  ;;  %v1156_v34 = vmul.f32 0.6931472, %v1482_v51  ;;  %v1172_v22 = vadd.f32 %v1152_v37, %v1108_v13  ;;  %v531_v26 = vsub.f32 %v2840_v38, %v2078_v48  ;;  %v1121_v54 = vld [vmem:[#allocation3 + $0x40] sm:$0xff]  ;;  %v1043_v37 = vld [vmem:[#allocation5 + $0x50] sm:$0xff] }
 0x30d   :  { %1213 = vst.msk [vmem:[%s2590_s4 + $0x20] sm:$0xff] %vm2831_vm12, %v1197_v52  ;;  %v1090_v25 = vmul.f32 %v1480_v40, %v1074_v9  ;;  %v545_v3 = vmul.f32 1.442695, %v523_v29  ;;  %v814_v48 = vld [vmem:[#allocation4 + $0x40] sm:$0xff]  ;;  %vm2847_vm9 = vmmov %vm2755_vm0 }
 0x30e   :  { %899 = vst.msk [vmem:[#allocation4 + $0x68] sm:$0xff] %vm2832_vm14, %v883_v36  ;;  %v1198_v20 = vmul.f32 -1.0, %v1182_v12  ;;  %v869_v8 = vpop.xlane.xlu0 %868  ;;  %v1174_v11 = vadd.f32 %v1156_v34, %v1110_v27  ;;  %v561_v55 = vmul.f32 1.442695, %v531_v26  ;;  %v1123_v36 = vld [vmem:[#allocation3 + $0x50] sm:$0xff]  ;;  %v1125_v9 = vld [vmem:[#allocation3 + $0x60] sm:$0xff]  ;;  %vm2848_vm12 = vmmov %vm2755_vm0 }
 0x30f   :  { %v1484_v49 = vpop.eup %1483  ;;  %v1186_v30 = vsub.f32 %v1090_v25, %v1170_v57  ;;  %v885_v6 = vadd.f32 %v869_v8, %v821_v28  ;;  %1495 = vpow2.f32 %v545_v3  ;;  %v1039_v25 = vld [vmem:[#allocation5 + $0x30] sm:$0xff]  ;;  %v1109_v3 = vld [vmem:[#allocation2 + $0x60] sm:$0xff]  ;;  %vm2849_vm14 = vmmov %vm2755_vm0 }
 0x310   :  { %v1486_v41 = vpop.eup %1485  ;;  %1214 = vst.msk [vmem:[%s2590_s4 + $0x28] sm:$0xff] %vm2833_vm11, %v1198_v20  ;;  %v1144_v60 = vmul.f32 0.6931472, %v1484_v49  ;;  %v1076_v62 = vld [vmem:[#allocation4 + $0x58] sm:$0xff]  ;;  %1497 = vpow2.f32 %v561_v55  ;;  %v816_v20 = vld [vmem:[#allocation4 + $0x50] sm:$0xff]  ;;  %vm2850_vm11 = vmmov %vm2755_vm0 }
 0x311   :  { %v1488_v17 = vpop.eup %1487  ;;  %v1202_v23 = vmul.f32 -1.0, %v1186_v30  ;;  %v1092_v53 = vmul.f32 %v1486_v41, %v1076_v62  ;;  %901 = vst.msk [vmem:[#allocation4 + $0x78] sm:$0xff] %vm2834_vm15, %v885_v6  ;;  %1499 = vlog2.f32 %v1121_v54  ;;  %v818_v41 = vld [vmem:[#allocation4 + $0x60] sm:$0xff]  ;;  %vm2851_vm15 = vmmov %vm2755_vm0 }
 0x312   :  { %v1088_v63 = vmul.f32 %v1488_v17, %v1072_v61  ;;  %v1168_v7 = vadd.f32 %v1144_v60, %v1104_v46  ;;  %1501 = vlog2.f32 %v1123_v36  ;;  %v1045_v61 = vld [vmem:[#allocation5 + $0x60] sm:$0xff]  ;;  %v1047_v17 = vld [vmem:[#allocation5 + $0x70] sm:$0xff] }
 0x313   :  { %v1490_v32 = vpop.eup %1489  ;;  %1218 = vst.msk [vmem:[%s2590_s4 + $0x48] sm:$0xff] %vm2835_vm10, %v1202_v23  ;;  %v1188_v15 = vsub.f32 %v1092_v53, %v1172_v22  ;;  %1503 = vrcp.f32 %v1041_v44  ;;  %v1105_v23 = vld [vmem:[#allocation2 + $0x40] sm:$0xff]  ;;  %v820_v53 = vld [vmem:[#allocation4 + $0x70] sm:$0xff] }
 0x314   :  { %v1492_v45 = vpop.eup %1491  ;;  %v1184_v21 = vsub.f32 %v1088_v63, %v1168_v7  ;;  %v1160_v5 = vmul.f32 0.6931472, %v1490_v32  ;;  %1505 = vlog2.f32 %v1125_v9 }
 0x315   :  { %v1078_v35 = vld [vmem:[#allocation4 + $0x68] sm:$0xff]  ;;  %v1204_v16 = vmul.f32 -1.0, %v1188_v15  ;;  %v1494_v50 = vpop.eup %1493 }
 0x316   :  { %v1094_v58 = vmul.f32 %v1492_v45, %v1078_v35  ;;  %v1200_v47 = vmul.f32 -1.0, %v1184_v21  ;;  %v1176_v56 = vadd.f32 %v1160_v5, %v1112_v0  ;;  %v1071_v21 = vld [vmem:[#allocation4 + $0x30] sm:$0xff] }
 0x317   :  { %1220 = vst.msk [vmem:[%s2590_s4 + $0x58] sm:$0xff] %vm2836_vm6, %v1204_v16 }
 0x318   :  { %v1190_v33 = vsub.f32 %v1094_v58, %v1174_v11  ;;  %1216 = vst.msk [vmem:[%s2590_s4 + $0x38] sm:$0xff] %vm2755_vm0, %v1200_v47  ;;  %v1080_v10 = vld [vmem:[#allocation4 + $0x78] sm:$0xff]  ;;  %v1107_v11 = vld [vmem:[#allocation2 + $0x50] sm:$0xff] }
 0x319   :  { %v1096_v19 = vmul.f32 %v1494_v50, %v1080_v10  ;;  %v1496_v31 = vpop.eup %1495  ;;  %v1103_v50 = vld [vmem:[#allocation2 + $0x30] sm:$0xff] }
 0x31a   :  { %v1206_v14 = vmul.f32 -1.0, %v1190_v33  ;;  %v731_v1 = vmul.f32 %v1496_v31, %v715_v42  ;;  %v1498_v18 = vpop.eup %1497 }
 0x31b   :  { %v1192_v2 = vsub.f32 %v1096_v19, %v1176_v56  ;;  %v739_v39 = vmul.f32 %v1498_v18, %v723_v24  ;;  %v1500_v8 = vpop.eup %1499  ;;  %v1111_v24 = vld [vmem:[#allocation2 + $0x70] sm:$0xff] }
 0x31c   :  { %1222 = vst.msk [vmem:[%s2590_s4 + $0x68] sm:$0xff] %vm2837_vm13, %v1206_v14  ;;  %v1146_v13 = vmul.f32 0.6931472, %v1500_v8  ;;  %v1502_v60 = vpop.eup %1501 }
 0x31d   :  { %v1208_v59 = vmul.f32 -1.0, %v1192_v2  ;;  %v1504_v34 = vpop.eup %1503  ;;  %v1150_v63 = vmul.f32 0.6931472, %v1502_v60 }
 0x31e   :  { %v1169_v7 = vadd.f32 %v1146_v13, %v1105_v23  ;;  %v1506_v15 = vpop.eup %1505 }
 0x31f   :  { %1224 = vst.msk [vmem:[%s2590_s4 + $0x78] sm:$0xff] %vm2838_vm5, %v1208_v59  ;;  %v1154_v0 = vmul.f32 0.6931472, %v1506_v15  ;;  %v1171_v14 = vadd.f32 %v1150_v63, %v1107_v11 }
 0x321   :  { %v1173_v42 = vadd.f32 %v1154_v0, %v1109_v3 }
 0x347   :  { %v754_v43 = vpop.xlane.xlu1 %753 }
 0x348   :  { %v779_v52 = vadd.f32 %v754_v43, %v731_v1 }
 0x34a   :  { %796 = vst.msk [vmem:[#allocation3 + $0x30] sm:$0xff] %vm2841_vm7, %v779_v52 }
 0x34b   :  { %v770_v40 = vpop.xlane.xlu1 %769 }
 0x34c   :  { %v787_v12 = vadd.f32 %v770_v40, %v739_v39 }
 0x34e   :  { %804 = vst.msk [vmem:[#allocation3 + $0x70] sm:$0xff] %vm2842_vm1, %v787_v12 }
 0x34f   :  { %v855_v28 = vpop.xlane.xlu1 %854 }
 0x350   :  { %v878_v57 = vadd.f32 %v855_v28, %v814_v48 }
 0x351   :  { %v1119_v51 = vld [vmem:[#allocation3 + $0x30] sm:$0xff] }
 0x352   :  { %1507 = vlog2.f32 %v1119_v51  ;;  %894 = vst.msk [vmem:[#allocation4 + $0x40] sm:$0xff] %vm2843_vm8, %v878_v57 }
 0x353   :  { %1509 = vrcp.f32 %v1043_v37  ;;  %v859_v49 = vpop.xlane.xlu1 %858 }
 0x354   :  { %1511 = vrcp.f32 %v1039_v25  ;;  %v880_v30 = vadd.f32 %v859_v49, %v816_v20 }
 0x355   :  { %v1127_v6 = vld [vmem:[#allocation3 + $0x70] sm:$0xff] }
 0x356   :  { %1513 = vlog2.f32 %v1127_v6  ;;  %896 = vst.msk [vmem:[#allocation4 + $0x50] sm:$0xff] %vm2844_vm2, %v880_v30 }
 0x357   :  { %1515 = vrcp.f32 %v1045_v61  ;;  %v863_v62 = vpop.xlane.xlu1 %862 }
 0x358   :  { %v882_v46 = vadd.f32 %v863_v62, %v818_v41  ;;  %1517 = vrcp.f32 %v1047_v17 }
 0x359   :  { %v1073_v22 = vld [vmem:[#allocation4 + $0x40] sm:$0xff] }
 0x35a   :  { %v1089_v32 = vmul.f32 %v1504_v34, %v1073_v22  ;;  %898 = vst.msk [vmem:[#allocation4 + $0x60] sm:$0xff] %vm2845_vm4, %v882_v46 }
 0x35b   :  { %v867_v45 = vpop.xlane.xlu1 %866 }
 0x35c   :  { %v1508_v27 = vpop.eup %1507  ;;  %v1185_v35 = vsub.f32 %v1089_v32, %v1169_v7  ;;  %v884_v5 = vadd.f32 %v867_v45, %v820_v53 }
 0x35d   :  { %v1510_v16 = vpop.eup %1509  ;;  %v1142_v58 = vmul.f32 0.6931472, %v1508_v27  ;;  %v1075_v47 = vld [vmem:[#allocation4 + $0x50] sm:$0xff] }
 0x35e   :  { %v1512_v33 = vpop.eup %1511  ;;  %v1201_v10 = vmul.f32 -1.0, %v1185_v35  ;;  %v1091_v56 = vmul.f32 %v1510_v16, %v1075_v47  ;;  %900 = vst.msk [vmem:[#allocation4 + $0x70] sm:$0xff] %vm2846_vm3, %v884_v5 }
 0x35f   :  { %v1087_v19 = vmul.f32 %v1512_v33, %v1071_v21  ;;  %v1167_v2 = vadd.f32 %v1142_v58, %v1103_v50 }
 0x360   :  { %v1514_v59 = vpop.eup %1513  ;;  %1217 = vst.msk [vmem:[%s2590_s4 + $0x40] sm:$0xff] %vm2847_vm9, %v1201_v10  ;;  %v1187_v4 = vsub.f32 %v1091_v56, %v1171_v14 }
 0x361   :  { %v1516_v29 = vpop.eup %1515  ;;  %v1183_v38 = vsub.f32 %v1087_v19, %v1167_v2  ;;  %v1077_v26 = vld [vmem:[#allocation4 + $0x60] sm:$0xff]  ;;  %v1158_v55 = vmul.f32 0.6931472, %v1514_v59 }
 0x362   :  { %v1203_v31 = vmul.f32 -1.0, %v1187_v4  ;;  %v1093_v54 = vmul.f32 %v1516_v29, %v1077_v26  ;;  %v1518_v43 = vpop.eup %1517 }
 0x363   :  { %v1199_v1 = vmul.f32 -1.0, %v1183_v38  ;;  %v1175_v39 = vadd.f32 %v1158_v55, %v1111_v24 }
 0x364   :  { %1219 = vst.msk [vmem:[%s2590_s4 + $0x50] sm:$0xff] %vm2848_vm12, %v1203_v31  ;;  %v1189_v18 = vsub.f32 %v1093_v54, %v1173_v42 }
 0x365   :  { %1215 = vst.msk [vmem:[%s2590_s4 + $0x30] sm:$0xff] %vm2849_vm14, %v1199_v1  ;;  %v1079_v52 = vld [vmem:[#allocation4 + $0x70] sm:$0xff] }
 0x366   :  { %v1205_v36 = vmul.f32 -1.0, %v1189_v18  ;;  %v1095_v40 = vmul.f32 %v1518_v43, %v1079_v52 }
 0x368   :  { %1221 = vst.msk [vmem:[%s2590_s4 + $0x60] sm:$0xff] %vm2850_vm11, %v1205_v36  ;;  %v1191_v44 = vsub.f32 %v1095_v40, %v1175_v39 }
 0x36a   :  { %v1207_v12 = vmul.f32 -1.0, %v1191_v44 }
 0x36c   :  { %1223 = vst.msk [vmem:[%s2590_s4 + $0x70] sm:$0xff] %vm2851_vm15, %v1207_v12 }
 0x36d   :  { %1229 = vsyncpa [#allocation7], 1 }

</bundles_post_ra>
